<compile_context>
chip_gen: v6e
topology: v6e:2x2x1
jax: 0.10.0
libtpu: 0.0.40
codegen_flags: <defaults>
</compile_context>

<pallas_src>
import jax
import jax.numpy as jnp
from jax import lax
from jax.experimental import pallas as pl
from jax.experimental.pallas import tpu as pltpu

STATE_FEATS = 14
IN_FEATS = 28        # 14 + 14 after concatenation
HIDDEN = 10
N_ACTIONS = 3
LEAKY_SLOPE = 0.01   # nn.LeakyReLU default

H_PAD = 128          # hidden padded to a full lane width; lane HIDDEN carries the layer-2 bias 1.0
LOGIT_PAD = 128      # compute width of the second matmul (lane-dense, MXU friendly)
OUT_STORE = 8        # lanes actually written back to HBM (probs in lanes 0..2)
MAX_TILE_B = 1024    # cap on batch rows per grid step
NEG_BIG = -1e30      # large-negative logit for padded action lanes (not -inf: avoids inf-inf NaN)


def _inverse_model_kernel(s_ref, ns_ref, w1a_ref, w1b_ref, b1_ref, w2_ref, out_ref):
    # s_ref, ns_ref: (tile_b, 14)   raw state / next-state features
    # w1a_ref/w1b_ref: (14, 128)    W1^T halves (cols >= HIDDEN are zero)
    # b1_ref: (1, 128)              lanes 0..9 = b1, lane 10 = 1.0 (layer-2 bias lane), rest 0
    # w2_ref: (128, 128)            rows 0..9 = W2^T, row 10 = [b2 | -1e30 ...], rest 0
    # out_ref: (tile_b, 8)          softmax probs in lanes 0..2, zeros in lanes 3..7
    hp = lax.Precision.HIGHEST

    # Linear(28 -> 10): split contraction over the two 14-wide inputs; bias row added once.
    h = (jnp.dot(s_ref[...], w1a_ref[...],
                 preferred_element_type=jnp.float32, precision=hp)
         + jnp.dot(ns_ref[...], w1b_ref[...],
                   preferred_element_type=jnp.float32, precision=hp)
         + b1_ref[...])
    # LeakyReLU (negative_slope = 0.01).  Lane HIDDEN is exactly 1.0 and passes through;
    # padded hidden lanes stay exactly 0.
    h = jnp.where(h >= 0.0, h, LEAKY_SLOPE * h)

    # Linear(10 -> 3) with bias folded into row HIDDEN of w2 (h's lane HIDDEN == 1.0).
    # Padded action lanes come out as -1e30 because w2's bias row holds -1e30 there.
    logits = jnp.dot(h, w2_ref[...], preferred_element_type=jnp.float32, precision=hp)

    # Softmax over the 3 real action lanes (padded lanes underflow to exactly 0).
    m = jnp.max(logits, axis=-1, keepdims=True)
    e = jnp.exp(logits - m)
    denom = jnp.sum(e, axis=-1, keepdims=True)
    probs = e / denom

    # Narrow lane-slice store: only 8 lanes go back to HBM.
    out_ref[...] = probs[:, :OUT_STORE]


def pack_params(params, dtype=jnp.float32):
    """One-time (init-time) packing: pre-transpose, split, fold biases, pre-mask."""
    w1, b1, w2, b2 = params                          # (10,28), (10,), (3,10), (3,)
    w1_t = w1.T.astype(dtype)                        # (28, 10)

    w1a = jnp.zeros((STATE_FEATS, H_PAD), dtype)
    w1a = w1a.at[:, :HIDDEN].set(w1_t[:STATE_FEATS])
    w1b = jnp.zeros((STATE_FEATS, H_PAD), dtype)
    w1b = w1b.at[:, :HIDDEN].set(w1_t[STATE_FEATS:])

    b1_row = jnp.zeros((1, H_PAD), dtype)
    b1_row = b1_row.at[0, :HIDDEN].set(b1.astype(dtype))
    b1_row = b1_row.at[0, HIDDEN].set(1.0)           # bias lane feeding layer 2

    w2_aug = jnp.zeros((H_PAD, LOGIT_PAD), dtype)
    w2_aug = w2_aug.at[:HIDDEN, :N_ACTIONS].set(w2.T.astype(dtype))
    w2_aug = w2_aug.at[HIDDEN, :N_ACTIONS].set(b2.astype(dtype))
    w2_aug = w2_aug.at[HIDDEN, N_ACTIONS:].set(NEG_BIG)  # pre-masked padded logits
    return w1a, w1b, b1_row, w2_aug


def _round_up(x, m):
    return ((x + m - 1) // m) * m


def _pick_tile_b(b, max_tile=MAX_TILE_B):
    """Rows per grid step: large enough to amortize per-step overhead, clamped for
    small batches, and (when possible) giving >= 2 grid steps for v7x's 2 cores."""
    b8 = _round_up(max(int(b), 1), 8)
    if b8 <= 8:
        return 8
    half = _round_up((b8 + 1) // 2, 8)
    return max(8, min(max_tile, half))


def inverse_model_forward_batched(state_features, next_state_features, packed_params):
    """state_features, next_state_features: (B, 14) float32 -> (B, 3) probs."""
    w1a, w1b, b1_row, w2_aug = packed_params
    b = state_features.shape[0]
    tile_b = _pick_tile_b(b)
    b_pad = _round_up(b, tile_b)
    n_tiles = b_pad // tile_b

    s = state_features.astype(jnp.float32)
    ns = next_state_features.astype(jnp.float32)
    if b_pad != b:
        s = jnp.pad(s, ((0, b_pad - b), (0, 0)))
        ns = jnp.pad(ns, ((0, b_pad - b), (0, 0)))

    cost = pl.CostEstimate(
        flops=int(b_pad) * (2 * 2 * STATE_FEATS * H_PAD + 2 * H_PAD * LOGIT_PAD),
        transcendentals=int(b_pad) * LOGIT_PAD,
        bytes_accessed=int(b_pad) * (2 * STATE_FEATS + OUT_STORE) * 4
        + (2 * STATE_FEATS * H_PAD + H_PAD + H_PAD * LOGIT_PAD) * 4,
    )

    out = pl.pallas_call(
        _inverse_model_kernel,
        out_shape=jax.ShapeDtypeStruct((b_pad, OUT_STORE), jnp.float32),
        grid=(n_tiles,),
        in_specs=[
            pl.BlockSpec((tile_b, STATE_FEATS), lambda i: (i, 0)),   # state rows
            pl.BlockSpec((tile_b, STATE_FEATS), lambda i: (i, 0)),   # next-state rows
            pl.BlockSpec((STATE_FEATS, H_PAD), lambda i: (0, 0)),    # W1a (resident)
            pl.BlockSpec((STATE_FEATS, H_PAD), lambda i: (0, 0)),    # W1b (resident)
            pl.BlockSpec((1, H_PAD), lambda i: (0, 0)),              # b1 row (resident)
            pl.BlockSpec((H_PAD, LOGIT_PAD), lambda i: (0, 0)),      # W2 aug (resident)
        ],
        out_specs=pl.BlockSpec((tile_b, OUT_STORE), lambda i: (i, 0)),
        compiler_params=pltpu.CompilerParams(
            dimension_semantics=("parallel",),
        ),
        cost_estimate=cost,
    )(s, ns, w1a, w1b, b1_row, w2_aug)
    return out[:b, :N_ACTIONS]


def inverse_model_forward(state_features, next_state_features, packed_params):
    """Original module API: (14,) + (14,) -> (3,) probs."""
    out = inverse_model_forward_batched(
        state_features[None, :], next_state_features[None, :], packed_params)
    return out[0]


# ---------------- init (matches PyTorch: xavier_uniform weights, default bias) ----------------

def _xavier_uniform(key, out_f, in_f):
    limit = (6.0 / (in_f + out_f)) ** 0.5
    return jax.random.uniform(key, (out_f, in_f), jnp.float32, -limit, limit)


def _default_bias(key, out_f, in_f):
    bound = 1.0 / (in_f ** 0.5)
    return jax.random.uniform(key, (out_f,), jnp.float32, -bound, bound)


def init_params(key):
    k1, k2, k3, k4 = jax.random.split(key, 4)
    w1 = _xavier_uniform(k1, HIDDEN, IN_FEATS)     # (10, 28)
    b1 = _default_bias(k2, HIDDEN, IN_FEATS)       # (10,)
    w2 = _xavier_uniform(k3, N_ACTIONS, HIDDEN)    # (3, 10)
    b2 = _default_bias(k4, N_ACTIONS, HIDDEN)      # (3,)
    return (w1, b1, w2, b2)


# ---------------- pure-JAX reference ----------------

def _reference_forward_batched(state_features, next_state_features, params):
    w1, b1, w2, b2 = params
    hp = lax.Precision.HIGHEST
    feats = jnp.concatenate([state_features, next_state_features], axis=-1)
    h = jnp.einsum("bi,hi->bh", feats, w1, precision=hp) + b1
    h = jnp.where(h >= 0.0, h, LEAKY_SLOPE * h)
    logits = jnp.einsum("bh,ah->ba", h, w2, precision=hp) + b2
    return jax.nn.softmax(logits, axis=-1)


if __name__ == "__main__":
    key = jax.random.PRNGKey(0)
    kp, ks, kn = jax.random.split(key, 3)

    params = init_params(kp)
    packed = pack_params(params)                    # init-time packing, out of hot path

    # Batched demo: B=256 -> two parallel grid tiles of 128 rows.
    B = 256
    state_features = jax.random.normal(ks, (B, STATE_FEATS), jnp.float32)
    next_state_features = jax.random.normal(kn, (B, STATE_FEATS), jnp.float32)

    fwd = jax.jit(lambda s, n: inverse_model_forward_batched(s, n, packed))
    out = jax.block_until_ready(fwd(state_features, next_state_features))

    ref = _reference_forward_batched(state_features, next_state_features, params)
    assert out.shape == (B, N_ACTIONS)
    assert jnp.allclose(out, ref, atol=1e-4, rtol=1e-4), (out[:4], ref[:4])
    assert jnp.allclose(jnp.sum(out, axis=-1), 1.0, atol=1e-4)

    # Non-tile-multiple batch exercises the row-padding path and clamped tile.
    B2 = 37
    out2 = jax.block_until_ready(
        inverse_model_forward_batched(state_features[:B2], next_state_features[:B2], packed))
    assert out2.shape == (B2, N_ACTIONS)
    assert jnp.allclose(out2, ref[:B2], atol=1e-4, rtol=1e-4)

    # Original single-sample API (matches the PyTorch forward signature).
    out1 = jax.block_until_ready(
        inverse_model_forward(state_features[0], next_state_features[0], packed))
    assert out1.shape == (N_ACTIONS,)
    assert jnp.allclose(out1, ref[0], atol=1e-4, rtol=1e-4), (out1, ref[0])

    print("KERNEL_OK")
</pallas_src>

<mosaic_0001>
module attributes {stable_mosaic.version = 11 : i64} {
  func.func @_inverse_model_kernel(%arg0: i32, %arg1: memref<128x14xf32, #tpu.memory_space<vmem>>, %arg2: memref<128x14xf32, #tpu.memory_space<vmem>>, %arg3: memref<14x128xf32, #tpu.memory_space<vmem>>, %arg4: memref<14x128xf32, #tpu.memory_space<vmem>>, %arg5: memref<1x128xf32, #tpu.memory_space<vmem>>, %arg6: memref<128x128xf32, #tpu.memory_space<vmem>>, %arg7: memref<128x8xf32, #tpu.memory_space<vmem>>) attributes {dimension_semantics = [#tpu.dimension_semantics<parallel>], iteration_bounds = array<i64: 2>, scalar_prefetch = 0 : i64, scratch_operands = 0 : i64, tpu.core_type = #tpu.core_type<tc>, window_params = [{transform_indices = @transform_0, window_bounds = array<i64: 128, 14>}, {transform_indices = @transform_1, window_bounds = array<i64: 128, 14>}, {pipeline_mode = #tpu.pipeline_mode<synchronous>, transform_indices = @transform_2, window_bounds = array<i64: 14, 128>}, {pipeline_mode = #tpu.pipeline_mode<synchronous>, transform_indices = @transform_3, window_bounds = array<i64: 14, 128>}, {pipeline_mode = #tpu.pipeline_mode<synchronous>, transform_indices = @transform_4, window_bounds = array<i64: 1, 128>}, {pipeline_mode = #tpu.pipeline_mode<synchronous>, transform_indices = @transform_5, window_bounds = array<i64: 128, 128>}, {transform_indices = @transform_6, window_bounds = array<i64: 128, 8>}]} {
    %c0 = arith.constant 0 : index
    %c0_0 = arith.constant 0 : index
    %0 = vector.load %arg1[%c0, %c0_0] : memref<128x14xf32, #tpu.memory_space<vmem>>, vector<128x14xf32>
    %c0_1 = arith.constant 0 : index
    %c0_2 = arith.constant 0 : index
    %1 = vector.load %arg3[%c0_1, %c0_2] : memref<14x128xf32, #tpu.memory_space<vmem>>, vector<14x128xf32>
    %cst = arith.constant dense<0.000000e+00> : vector<128x128xf32>
    %2 = tpu.matmul %0, %1, %cst {dimension_numbers = #tpu.dot_dimension_numbers<[1], [0], [0], [1], [0, 0, 1, 1], [], []>, precision = #tpu.contract_precision<fp32>} : vector<128x14xf32>, vector<14x128xf32>, vector<128x128xf32> -> vector<128x128xf32>
    %c0_3 = arith.constant 0 : index
    %c0_4 = arith.constant 0 : index
    %3 = vector.load %arg2[%c0_3, %c0_4] : memref<128x14xf32, #tpu.memory_space<vmem>>, vector<128x14xf32>
    %c0_5 = arith.constant 0 : index
    %c0_6 = arith.constant 0 : index
    %4 = vector.load %arg4[%c0_5, %c0_6] : memref<14x128xf32, #tpu.memory_space<vmem>>, vector<14x128xf32>
    %cst_7 = arith.constant dense<0.000000e+00> : vector<128x128xf32>
    %5 = tpu.matmul %3, %4, %cst_7 {dimension_numbers = #tpu.dot_dimension_numbers<[1], [0], [0], [1], [0, 0, 1, 1], [], []>, precision = #tpu.contract_precision<fp32>} : vector<128x14xf32>, vector<14x128xf32>, vector<128x128xf32> -> vector<128x128xf32>
    %6 = arith.addf %2, %5 : vector<128x128xf32>
    %c0_8 = arith.constant 0 : index
    %c0_9 = arith.constant 0 : index
    %7 = vector.load %arg5[%c0_8, %c0_9] : memref<1x128xf32, #tpu.memory_space<vmem>>, vector<1x128xf32>
    %8 = vector.broadcast %7 : vector<1x128xf32> to vector<128x128xf32>
    %9 = arith.addf %6, %8 : vector<128x128xf32>
    %cst_10 = arith.constant 0.000000e+00 : f32
    %10 = vector.broadcast %cst_10 : f32 to vector<128x128xf32>
    %11 = arith.cmpf oge, %9, %10 : vector<128x128xf32>
    %cst_11 = arith.constant 0.00999999977 : f32
    %12 = vector.broadcast %cst_11 : f32 to vector<128x128xf32>
    %13 = arith.mulf %12, %9 : vector<128x128xf32>
    %14 = arith.select %11, %9, %13 : vector<128x128xi1>, vector<128x128xf32>
    %c0_12 = arith.constant 0 : index
    %c0_13 = arith.constant 0 : index
    %15 = vector.load %arg6[%c0_12, %c0_13] : memref<128x128xf32, #tpu.memory_space<vmem>>, vector<128x128xf32>
    %cst_14 = arith.constant dense<0.000000e+00> : vector<128x128xf32>
    %16 = tpu.matmul %14, %15, %cst_14 {dimension_numbers = #tpu.dot_dimension_numbers<[1], [0], [0], [1], [0, 0, 1, 1], [], []>, precision = #tpu.contract_precision<fp32>} : vector<128x128xf32>, vector<128x128xf32>, vector<128x128xf32> -> vector<128x128xf32>
    %cst_15 = arith.constant dense<0xFF800000> : vector<128xf32>
    %17 = vector.multi_reduction <maximumf>, %16, %cst_15 [1] : vector<128x128xf32> to vector<128xf32>
    %18 = vector.shape_cast %17 : vector<128xf32> to vector<128x1xf32>
    %19 = vector.broadcast %18 : vector<128x1xf32> to vector<128x128xf32>
    %20 = arith.subf %16, %19 : vector<128x128xf32>
    %21 = math.exp %20 : vector<128x128xf32>
    %cst_16 = arith.constant dense<0.000000e+00> : vector<128xf32>
    %22 = vector.multi_reduction <add>, %21, %cst_16 [1] : vector<128x128xf32> to vector<128xf32>
    %23 = vector.shape_cast %22 : vector<128xf32> to vector<128x1xf32>
    %24 = vector.broadcast %23 : vector<128x1xf32> to vector<128x128xf32>
    %25 = arith.divf %21, %24 : vector<128x128xf32>
    %26 = vector.extract_strided_slice %25 {offsets = [0, 0], sizes = [128, 8], strides = [1, 1]} : vector<128x128xf32> to vector<128x8xf32>
    %c0_17 = arith.constant 0 : index
    %c0_18 = arith.constant 0 : index
    %27 = vector.load %arg7[%c0_17, %c0_18] : memref<128x8xf32, #tpu.memory_space<vmem>>, vector<128x8xf32>
    tpu.vector_store %arg7[%c0_17, %c0_18], %26 {strides = array<i32>} : memref<128x8xf32, #tpu.memory_space<vmem>>, vector<128x8xf32>,
    return
  }
  func.func @transform_0(%arg0: i32) -> (i32, i32) {
    %c0_i32 = arith.constant 0 : i32
    %c0_i32_0 = arith.constant 0 : i32
    return %arg0, %c0_i32 : i32, i32
  }
  func.func @transform_1(%arg0: i32) -> (i32, i32) {
    %c0_i32 = arith.constant 0 : i32
    %c0_i32_0 = arith.constant 0 : i32
    return %arg0, %c0_i32 : i32, i32
  }
  func.func @transform_2(%arg0: i32) -> (i32, i32) {
    %c0_i32 = arith.constant 0 : i32
    %c0_i32_0 = arith.constant 0 : i32
    %c0_i32_1 = arith.constant 0 : i32
    return %c0_i32, %c0_i32_0 : i32, i32
  }
  func.func @transform_3(%arg0: i32) -> (i32, i32) {
    %c0_i32 = arith.constant 0 : i32
    %c0_i32_0 = arith.constant 0 : i32
    %c0_i32_1 = arith.constant 0 : i32
    return %c0_i32, %c0_i32_0 : i32, i32
  }
  func.func @transform_4(%arg0: i32) -> (i32, i32) {
    %c0_i32 = arith.constant 0 : i32
    %c0_i32_0 = arith.constant 0 : i32
    %c0_i32_1 = arith.constant 0 : i32
    return %c0_i32, %c0_i32_0 : i32, i32
  }
  func.func @transform_5(%arg0: i32) -> (i32, i32) {
    %c0_i32 = arith.constant 0 : i32
    %c0_i32_0 = arith.constant 0 : i32
    %c0_i32_1 = arith.constant 0 : i32
    return %c0_i32, %c0_i32_0 : i32, i32
  }
  func.func @transform_6(%arg0: i32) -> (i32, i32) {
    %c0_i32 = arith.constant 0 : i32
    %c0_i32_0 = arith.constant 0 : i32
    return %arg0, %c0_i32 : i32, i32
  }
}

</mosaic_0001>

<bundles_post_ra>
// kernel: _lambda_.1
= control target key start
LH: loop header
LB: loop body
LE: loop exit
PB: predicated region body
PF: predicated region fallthrough
CT: control target
= control target key end

     0   :  { %s5436_s21 = smov 0   ;;  %s7435_s0 = inlined_call_operand.vmem [shape: f32[256,14], index: 0, kind: input, shape index: {}]   ;;  %s7436_s1 = inlined_call_operand.vmem [shape: f32[256,14], index: 1, kind: input, shape index: {}]   ;;  %s7437_s2 = inlined_call_operand.vmem [shape: f32[14,128], index: 2, kind: input, shape index: {}]   ;;  %s7438_s3 = inlined_call_operand.vmem [shape: f32[14,128], index: 3, kind: input, shape index: {}]   ;;  %s7439_s4 = inlined_call_operand.vmem [shape: f32[1,128], index: 4, kind: input, shape index: {}]   ;;  %s7440_s5 = inlined_call_operand.vmem [shape: f32[128,128], index: 5, kind: input, shape index: {}]   ;;  %s7441_s6 = inlined_call_operand.vmem [shape: f32[256,8], index: 6, kind: output, shape index: {}]  }
   0x1 LB: > { %s4227_s22 = sadd.s32 4294967295, %s5399_s21   ;;  %p4231_p0 = scmp.ge.s32.totalorder %s5399_s21, 1  ;;  %s5399_s21 = sphi %s5436_s21, %s16_s21  }
   0x2   : > { %p224_p1 = scmp.lt.s32.totalorder %s5399_s21, 3 }
   0x4   : > { %p225_p2 = pnand %p4231_p0, %p224_p1 }
   0x6   : > { %228 = sbr.rel (%p225_p2) target bundleno = 1040 (0x410), region = 44 }
   0xb   : > { %v312_v0 = vld [vmem:[%s7438_s3 + $0x8] sm:$0x3f]  ;;  %vm362_vm0 = vcmask 1045504   ;;  %v311_v1 = vld [vmem:[%s7438_s3] sm:$0xff]  ;;  %s4232_s27 = sshll.u32 %s4227_s22, 4  ;;  %vm313_vm1 = vcmask 113664  }
   0xc   : > { %v364_v2 = vsel %vm362_vm0, %v312_v0, 0  ;;  %v5451_v3 = vand.u32 4294901760, %v311_v1  ;;  %p260_p3 = scmp.lt.s32.totalorder %s4232_s27, 31 }
   0xd   : > { %v5453_v4 = vand.u32 4294901760, %v364_v2 }
   0xe   : > { %v5456_v5 = vsub.f32 %v311_v1, %v5451_v3  ;;  %s7718_s27 = smov (!%p260_p3, %s4232_s27), 31 }
   0xf   : > { %4649 = vmatprep.subr.mxu0 %v5453_v4  ;;  %v5460_v6 = vsub.f32 %v364_v2, %v5453_v4  ;;  %s5466_s28 = sshll.u32 %s7718_s27, 3 }
  0x10   : > { %4650 = vmatpush3.msra.mxu0 %v5453_v4  ;;  %v5464_v7 = vand.u32 4294901760, %v5456_v5  ;;  %s5476_s7 = scalar_lea.vmem %s7436_s1, %s5466_s28  ;;  %s5608_s10 = scalar_lea.vmem %s7435_s0, %s5466_s28 }
  0x11   : > { %v5469_v8 = vand.u32 4294901760, %v5460_v6  ;;  %4651 = vmatprep.subr.mxu0 %v5451_v3  ;;  %v295_v10 = vld [vmem:[%s5476_s7] sm:$0xff]  ;;  %v296_v11 = vld [vmem:[%s5476_s7 + $0x8] sm:$0xff]  ;;  %v297_v12 = vld [vmem:[%s5476_s7 + $0x10] sm:$0xff] }
  0x12   : > { %4652 = vmatpush3.msra.mxu0 %v5451_v3  ;;  %v632_v9 = vsub.f32 %v5456_v5, %v5464_v7  ;;  %v315_v14 = vsel %vm313_vm1, %v295_v10, 0  ;;  %v318_v15 = vsel %vm313_vm1, %v296_v11, 0  ;;  %v321_v16 = vsel %vm313_vm1, %v297_v12, 0  ;;  %v298_v17 = vld [vmem:[%s5476_s7 + $0x18] sm:$0xff]  ;;  %v299_v18 = vld [vmem:[%s5476_s7 + $0x20] sm:$0xff]  ;;  %v300_v19 = vld [vmem:[%s5476_s7 + $0x28] sm:$0xff] }
  0x13   : > { %v625_v13 = vsub.f32 %v5460_v6, %v5469_v8  ;;  %4705 = vmatprep.subr.mxu0 %v5460_v6  ;;  %v5493_v21 = vand.u32 4294901760, %v315_v14  ;;  %v5495_v22 = vand.u32 4294901760, %v318_v15  ;;  %v5497_v23 = vand.u32 4294901760, %v321_v16  ;;  %v301_v24 = vld [vmem:[%s5476_s7 + $0x30] sm:$0xff]  ;;  %v302_v25 = vld [vmem:[%s5476_s7 + $0x38] sm:$0xff]  ;;  %v303_v54 = vld [vmem:[%s5476_s7 + $0x40] sm:$0xff] }
  0x14   : > { %v633_v20 = vand.u32 4294901760, %v632_v9  ;;  %v324_v27 = vsel %vm313_vm1, %v298_v17, 0  ;;  %v327_v28 = vsel %vm313_vm1, %v299_v18, 0  ;;  %v330_v29 = vsel %vm313_vm1, %v300_v19, 0  ;;  %v304_v55 = vld [vmem:[%s5476_s7 + $0x48] sm:$0xff]  ;;  %v305_v56 = vld [vmem:[%s5476_s7 + $0x50] sm:$0xff] }
  0x15   : > { %v626_v26 = vand.u32 4294901760, %v625_v13  ;;  %v5505_v30 = vsub.f32 %v315_v14, %v5493_v21  ;;  %4681 = vmatprep.mubr.f32.mxu1 %v5493_v21  ;;  %v5509_v31 = vsub.f32 %v318_v15, %v5495_v22  ;;  %v5512_v32 = vsub.f32 %v321_v16, %v5497_v23  ;;  %v306_v1 = vld [vmem:[%s5476_s7 + $0x58] sm:$0xff]  ;;  %v307_v11 = vld [vmem:[%s5476_s7 + $0x60] sm:$0xff]  ;;  %v308_v16 = vld [vmem:[%s5476_s7 + $0x68] sm:$0xff] }
  0x16   : > { %v5514_v33 = vand.u32 4294901760, %v324_v27  ;;  %v5516_v34 = vand.u32 4294901760, %v327_v28  ;;  %v5518_v35 = vand.u32 4294901760, %v330_v29  ;;  %v333_v36 = vsel %vm313_vm1, %v301_v24, 0  ;;  %v309_v24 = vld [vmem:[%s5476_s7 + $0x70] sm:$0xff] }
  0x17   : > { %4677 = vmatprep.subr.mxu1 %v626_v26  ;;  %v336_v37 = vsel %vm313_vm1, %v302_v25, 0  ;;  %v435_v38 = vand.u32 4294901760, %v5505_v30  ;;  %v445_v39 = vand.u32 4294901760, %v5509_v31  ;;  %v455_v40 = vand.u32 4294901760, %v5512_v32  ;;  %v310_v25 = vld [vmem:[%s5476_s7 + $0x78] sm:$0xff]  ;;  %s7382_s7 = scalar_lea.vmem %s7441_s6, %s5466_s28 }
  0x18   : > { %4678 = vmatpush3.msra.mxu1 %v626_v26  ;;  %v5526_v41 = vsub.f32 %v324_v27, %v5514_v33  ;;  %v5529_v42 = vsub.f32 %v327_v28, %v5516_v34  ;;  %v5532_v43 = vsub.f32 %v330_v29, %v5518_v35  ;;  %v5534_v44 = vand.u32 4294901760, %v333_v36 }
  0x19   : > { %4679 = vmatprep.subr.mxu1 %v633_v20  ;;  %v5536_v45 = vand.u32 4294901760, %v336_v37  ;;  %v436_v46 = vsub.f32 %v5505_v30, %v435_v38  ;;  %v446_v47 = vsub.f32 %v5509_v31, %v445_v39  ;;  %v456_v48 = vsub.f32 %v5512_v32, %v455_v40 }
  0x1a   : > { %4680 = vmatpush3.msra.mxu1 %v633_v20  ;;  %v465_v49 = vand.u32 4294901760, %v5526_v41  ;;  %v7453_v50 = vand.u32 4294901760, %v5529_v42  ;;  %v7450_v51 = vand.u32 4294901760, %v5532_v43  ;;  %v5553_v52 = vsub.f32 %v333_v36, %v5534_v44 }
  0x1b   : > { %4682 = vmatmul.mubr.f32.vlgmr.msra.gmra.mxu1 %v5495_v22  ;;  %4733 = vmatprep.subr.mxu1 %v5453_v4  ;;  %v5556_v53 = vsub.f32 %v336_v37, %v5536_v45  ;;  %v437_v57 = vand.u32 4294901760, %v436_v46  ;;  %v447_v58 = vand.u32 4294901760, %v446_v47  ;;  %v457_v59 = vand.u32 4294901760, %v456_v48 }
  0x1c   : > { %4734 = vmatpush3.msra.mxu1 %v5453_v4  ;;  %4684 = vmatprep.mubr.f32.mxu1 %v5497_v23  ;;  %v466_v60 = vsub.f32 %v5526_v41, %v465_v49  ;;  %v476_v61 = vsub.f32 %v5529_v42, %v7453_v50  ;;  %v486_v62 = vsub.f32 %v5532_v43, %v7450_v51  ;;  %v7449_v63 = vand.u32 4294901760, %v5553_v52 }
  0x1d   : > { %v7447_v0 = vand.u32 4294901760, %v5556_v53  ;;  %4735 = vmatprep.subr.mxu1 %v5451_v3  ;;  %4653 = vmatprep.mubr.f32.mxu0 %v437_v57  ;;  %v339_v2 = vsel %vm313_vm1, %v303_v54, 0  ;;  %v342_v9 = vsel %vm313_vm1, %v304_v55, 0  ;;  %v345_v10 = vsel %vm313_vm1, %v305_v56, 0 }
  0x1e   : > { %4736 = vmatpush3.msra.mxu1 %v5451_v3  ;;  %4654 = vmatmul.mubr.f32.vlgmr.msra.gmra.mxu0 %v447_v58  ;;  %v467_v12 = vand.u32 4294901760, %v466_v60  ;;  %v477_v13 = vand.u32 4294901760, %v476_v61  ;;  %v487_v14 = vand.u32 4294901760, %v486_v62  ;;  %v496_v15 = vsub.f32 %v5553_v52, %v7449_v63 }
  0x1f   : > { %4685 = vmatmul.mubr.f32.gmra.mxu1 %v5514_v33  ;;  %4706 = vmatpush3.msra.mxu0 %v5460_v6  ;;  %v5587_v17 = vand.u32 4294901760, %v339_v2  ;;  %v5589_v18 = vand.u32 4294901760, %v342_v9  ;;  %v5591_v19 = vand.u32 4294901760, %v345_v10  ;;  %v348_v20 = vsel %vm313_vm1, %v306_v1, 0 }
  0x20   : > { %4656 = vmatprep.mubr.f32.mxu0 %v457_v59  ;;  %4687 = vmatprep.mubr.f32.mxu1 %v5516_v34  ;;  %v497_v26 = vand.u32 4294901760, %v496_v15  ;;  %v506_v27 = vsub.f32 %v5556_v53, %v7447_v0  ;;  %v5601_v6 = vand.u32 4294901760, %v348_v20  ;;  %v351_v28 = vsel %vm313_vm1, %v307_v11, 0  ;;  %v277_v59 = vld [vmem:[%s5608_s10] sm:$0xff] }
  0x21   : > { %4707 = vmatprep.subr.mxu0 %v5456_v5  ;;  %v5611_v29 = vsub.f32 %v339_v2, %v5587_v17  ;;  %v5614_v36 = vsub.f32 %v342_v9, %v5589_v18  ;;  %v5618_v37 = vsub.f32 %v345_v10, %v5591_v19  ;;  %v5620_v46 = vand.u32 4294901760, %v351_v28  ;;  %4789 = vmatprep.subr.mxu1 %v5453_v4 }
  0x22   : > { %4708 = vmatpush3.msra.mxu0 %v5456_v5  ;;  %v5625_v47 = vsub.f32 %v348_v20, %v5601_v6  ;;  %v354_v48 = vsel %vm313_vm1, %v308_v16, 0  ;;  %v357_v54 = vsel %vm313_vm1, %v309_v24, 0  ;;  %v360_v5 = vsel %vm313_vm1, %v310_v25, 0  ;;  %v278_v24 = vld [vmem:[%s5608_s10 + $0x8] sm:$0xff] }
  0x23   : > { %4657 = vmatmul.mubr.f32.gmra.mxu0 %v467_v12  ;;  %4688 = vmatmul.mubr.f32.gmra.mxu1 %v5518_v35  ;;  %v7445_v55 = vand.u32 4294901760, %v5611_v29  ;;  %v7444_v56 = vand.u32 4294901760, %v5614_v36  ;;  %v7443_v57 = vand.u32 4294901760, %v5618_v37  ;;  %v5635_v58 = vsub.f32 %v351_v28, %v5620_v46  ;;  %v294_v12 = vld [vmem:[%s7437_s2 + $0x8] sm:$0x3f] }
  0x24   : > { %4659 = vmatprep.mubr.f32.mxu0 %v477_v13  ;;  %4690 = vmatprep.mubr.f32.mxu1 %v5534_v44  ;;  %v5638_v60 = vand.u32 4294901760, %v354_v48  ;;  %v5640_v61 = vand.u32 4294901760, %v357_v54  ;;  %v507_v62 = vand.u32 4294901760, %v506_v27  ;;  %v7442_v2 = vand.u32 4294901760, %v5625_v47  ;;  %v279_v27 = vld [vmem:[%s5608_s10 + $0x10] sm:$0xff] }
  0x25   : > { %4761 = vmatprep.subr.mxu0 %v5469_v8  ;;  %v516_v1 = vsub.f32 %v5611_v29, %v7445_v55  ;;  %v526_v9 = vsub.f32 %v5614_v36, %v7444_v56  ;;  %v5654_v11 = vand.u32 4294901760, %v360_v5  ;;  %v5660_v13 = vsel %vm313_vm1, %v277_v59, 0 }
  0x26   : > { %v5652_v10 = vsub.f32 %v354_v48, %v5638_v60  ;;  %v536_v15 = vsub.f32 %v5618_v37, %v7443_v57  ;;  %v7446_v16 = vand.u32 4294901760, %v5635_v58  ;;  %v5668_v20 = vsub.f32 %v357_v54, %v5640_v61  ;;  %v282_v57 = vld [vmem:[%s5608_s10 + $0x28] sm:$0xff] }
  0x27   : > { %4660 = vmatmul.mubr.f32.gmra.mxu0 %v487_v14  ;;  %4691 = vmatmul.mubr.f32.gmra.mxu1 %v5536_v45  ;;  %v517_v14 = vand.u32 4294901760, %v516_v1  ;;  %v546_v25 = vsub.f32 %v5625_v47, %v7442_v2  ;;  %v527_v28 = vand.u32 4294901760, %v526_v9  ;;  %v5679_v54 = vsub.f32 %v360_v5, %v5654_v11  ;;  %v280_v1 = vld [vmem:[%s5608_s10 + $0x18] sm:$0xff] }
  0x28   : > { %4662 = vmatprep.mubr.f32.mxu0 %v497_v26  ;;  %4693 = vmatprep.mubr.f32.mxu1 %v5587_v17  ;;  %v1519_v26 = vsel %vm362_vm0, %v294_v12, 0  ;;  %v7448_v48 = vand.u32 4294901760, %v5652_v10  ;;  %v5682_v59 = vsel %vm313_vm1, %v278_v24, 0  ;;  %v537_v2 = vand.u32 4294901760, %v536_v15  ;;  %v281_v12 = vld [vmem:[%s5608_s10 + $0x20] sm:$0xff]  ;;  %v283_v15 = vld [vmem:[%s5608_s10 + $0x30] sm:$0xff] }
  0x29   : > { %v7451_v9 = vand.u32 4294901760, %v5668_v20  ;;  %v5693_v56 = vsel %vm313_vm1, %v279_v27, 0  ;;  %v547_v5 = vand.u32 4294901760, %v546_v25  ;;  %v5695_v55 = vand.u32 4294901760, %v1519_v26  ;;  %v284_v24 = vld [vmem:[%s5608_s10 + $0x38] sm:$0xff] }
  0x2a   : > { %v7452_v27 = vand.u32 4294901760, %v5679_v54  ;;  %v5708_v25 = vsel %vm313_vm1, %v281_v12, 0  ;;  %v5711_v0 = vsel %vm313_vm1, %v282_v57, 0  ;;  %v5721_v63 = vsel %vm313_vm1, %v284_v24, 0  ;;  %v285_v12 = vld [vmem:[%s5608_s10 + $0x40] sm:$0xff] }
  0x2b   : > { %4663 = vmatmul.mubr.f32.gmra.mxu0 %v507_v62  ;;  %4694 = vmatmul.mubr.f32.gmra.mxu1 %v5589_v18  ;;  %v556_v62 = vsub.f32 %v5635_v58, %v7446_v16  ;;  %v566_v16 = vsub.f32 %v5652_v10, %v7448_v48  ;;  %v5718_v48 = vsel %vm313_vm1, %v283_v15, 0  ;;  %v5725_v51 = vsub.f32 %v1519_v26, %v5695_v55  ;;  %v287_v26 = vld [vmem:[%s5608_s10 + $0x50] sm:$0xff] }
  0x2c   : > { %4665 = vmatprep.mubr.f32.mxu0 %v517_v14  ;;  %4696 = vmatprep.mubr.f32.mxu1 %v5591_v19  ;;  %v5698_v14 = vsel %vm313_vm1, %v280_v1, 0  ;;  %v5734_v24 = vsel %vm313_vm1, %v285_v12, 0  ;;  %v5749_v12 = vsel %vm313_vm1, %v287_v26, 0 }
  0x2d   : > { %v557_v1 = vand.u32 4294901760, %v556_v62  ;;  %v567_v57 = vand.u32 4294901760, %v566_v16  ;;  %v286_v62 = vld [vmem:[%s5608_s10 + $0x48] sm:$0xff] }
  0x2e   : > { %v5741_v16 = vsel %vm313_vm1, %v286_v62, 0 }
  0x2f   : > { %4666 = vmatmul.mubr.f32.gmra.mxu0 %v527_v28  ;;  %4697 = vmatmul.mubr.f32.gmra.mxu1 %v5601_v6  ;;  %v576_v28 = vsub.f32 %v5668_v20, %v7451_v9 }
  0x30   : > { %4668 = vmatprep.mubr.f32.mxu0 %v537_v2  ;;  %4699 = vmatprep.mubr.f32.mxu1 %v5620_v46  ;;  %v586_v2 = vsub.f32 %v5679_v54, %v7452_v27  ;;  %v290_v27 = vld [vmem:[%s5608_s10 + $0x68] sm:$0xff] }
  0x31   : > { %v577_v15 = vand.u32 4294901760, %v576_v28  ;;  %v289_v28 = vld [vmem:[%s5608_s10 + $0x60] sm:$0xff] }
  0x32   : > { %v587_v9 = vand.u32 4294901760, %v586_v2  ;;  %v291_v2 = vld [vmem:[%s5608_s10 + $0x70] sm:$0xff] }
  0x33   : > { %4669 = vmatmul.mubr.f32.gmra.mxu0 %v547_v5  ;;  %4700 = vmatmul.mubr.f32.gmra.mxu1 %v5638_v60  ;;  %v5738_v5 = vand.u32 4294901760, %v5725_v51  ;;  %v5773_v26 = vsel %vm313_vm1, %v291_v2, 0  ;;  %v5955_v2 = vand.u32 4294901760, %v5741_v16 }
  0x34   : > { %4671 = vmatprep.mubr.f32.mxu0 %v557_v1  ;;  %4702 = vmatprep.mubr.f32.mxu1 %v5640_v61  ;;  %v288_v1 = vld [vmem:[%s5608_s10 + $0x58] sm:$0xff] }
  0x35   : > { %v1780_v50 = vsub.f32 %v5725_v51, %v5738_v5  ;;  %v5755_v62 = vsel %vm313_vm1, %v288_v1, 0 }
  0x37   : > { %4672 = vmatmul.mubr.f32.gmra.mxu0 %v567_v57  ;;  %4703 = vmatmul.mubr.f32.gmra.mxu1 %v5654_v11  ;;  %v5758_v57 = vsel %vm313_vm1, %v289_v28, 0 }
  0x38   : > { %4674 = vmatprep.mubr.f32.mxu0 %v577_v15  ;;  %4737 = vmatprep.mubr.f32.mxu1 %v435_v38  ;;  %v5766_v38 = vsel %vm313_vm1, %v290_v27, 0  ;;  %v292_v15 = vld [vmem:[%s5608_s10 + $0x78] sm:$0xff]  ;;  %v5941_v27 = vand.u32 4294901760, %v5734_v24 }
  0x3b   : > { %4675 = vmatmul.mubr.f32.gmra.mxu0 %v587_v9  ;;  %4738 = vmatmul.mubr.f32.vlgmr.msra.gmra.mxu1 %v445_v39  ;;  %v1781_v9 = vand.u32 4294901760, %v1780_v50 }
  0x3c   : > { %4709 = vmatprep.mubr.f32.mxu0 %v5505_v30  ;;  %4790 = vmatpush3.msra.mxu1 %v5453_v4  ;;  %v5780_v4 = vsel %vm313_vm1, %v292_v15, 0  ;;  %v7557_v30 = vand.u32 4294901760, %v5529_v42 }
  0x3d   : > { %4740 = vmatprep.mubr.f32.mxu1 %v455_v40  ;;  %4791 = vmatprep.subr.mxu1 %v5451_v3  ;;  %v7562_v40 = vand.u32 4294901760, %v5614_v36 }
  0x3e   : > { %4792 = vmatpush3.msra.mxu1 %v5451_v3  ;;  %v7558_v3 = vand.u32 4294901760, %v5532_v43 }
  0x3f   : > { %4710 = vmatmul.mubr.f32.vlgmr.msra.gmra.mxu0 %v5509_v31  ;;  %4741 = vmatmul.mubr.f32.gmra.mxu1 %v465_v49  ;;  %v7559_v31 = vand.u32 4294901760, %v5553_v52  ;;  %v7565_v49 = vand.u32 4294901760, %v5635_v58 }
  0x40   : > { %4762 = vmatpush3.msra.mxu0 %v5469_v8  ;;  %4712 = vmatprep.mubr.f32.mxu0 %v5512_v32  ;;  %v293_v8 = vld [vmem:[%s7437_s2] sm:$0xff]  ;;  %v7561_v32 = vand.u32 4294901760, %v5611_v29 }
  0x41   : > { %4743 = vmatprep.mubr.f32.mxu1 %v7557_v30  ;;  %4763 = vmatprep.subr.mxu0 %v5464_v7  ;;  %v5804_v39 = vand.u32 4294901760, %v293_v8 }
  0x42   : > { %4764 = vmatpush3.msra.mxu0 %v5464_v7  ;;  %4845 = vmatprep.subr.mxu1 %v1781_v9  ;;  %v7560_v7 = vand.u32 4294901760, %v5556_v53 }
  0x43   : > { %4713 = vmatmul.mubr.f32.gmra.mxu0 %v5526_v41  ;;  %4744 = vmatmul.mubr.f32.gmra.mxu1 %v7558_v3  ;;  %v7563_v41 = vand.u32 4294901760, %v5618_v37 }
  0x44   : > { %4715 = vmatprep.mubr.f32.mxu0 %v5529_v42  ;;  %4746 = vmatprep.mubr.f32.mxu1 %v7559_v31  ;;  %v5813_v42 = vsub.f32 %v293_v8, %v5804_v39  ;;  %v5981_v8 = vsub.f32 %v5741_v16, %v5955_v2 }
  0x45   : > { %4817 = vmatprep.subr.mxu0 %v5695_v55 }
  0x46   : > { %v5822_v50 = vand.u32 4294901760, %v5813_v42 }
  0x47   : > { %4716 = vmatmul.mubr.f32.gmra.mxu0 %v5532_v43  ;;  %4747 = vmatmul.mubr.f32.gmra.mxu1 %v7560_v7  ;;  %v7564_v43 = vand.u32 4294901760, %v5625_v47  ;;  %v5984_v7 = vand.u32 4294901760, %v5755_v62 }
  0x48   : > { %4718 = vmatprep.mubr.f32.mxu0 %v5553_v52  ;;  %4749 = vmatprep.mubr.f32.mxu1 %v7561_v32  ;;  %v7566_v52 = vand.u32 4294901760, %v5652_v10 }
  0x4b   : > { %4719 = vmatmul.mubr.f32.gmra.mxu0 %v5556_v53  ;;  %4750 = vmatmul.mubr.f32.gmra.mxu1 %v7562_v40  ;;  %v7567_v53 = vand.u32 4294901760, %v5668_v20 }
  0x4c   : > { %4721 = vmatprep.mubr.f32.mxu0 %v5611_v29  ;;  %4752 = vmatprep.mubr.f32.mxu1 %v7563_v41  ;;  %v1787_v29 = vsub.f32 %v5813_v42, %v5822_v50 }
  0x4f   : > { %4722 = vmatmul.mubr.f32.gmra.mxu0 %v5614_v36  ;;  %4753 = vmatmul.mubr.f32.gmra.mxu1 %v7564_v43  ;;  %v7568_v36 = vand.u32 4294901760, %v5679_v54  ;;  %v5993_v43 = vand.u32 4294901760, %v5758_v57 }
  0x50   : > { %4724 = vmatprep.mubr.f32.mxu0 %v5618_v37  ;;  %4755 = vmatprep.mubr.f32.mxu1 %v7565_v49  ;;  %v1788_v37 = vand.u32 4294901760, %v1787_v29  ;;  %v1680_v49 = vand.u32 4294901760, %v5981_v8 }
  0x53   : > { %4725 = vmatmul.mubr.f32.gmra.mxu0 %v5625_v47  ;;  %4756 = vmatmul.mubr.f32.gmra.mxu1 %v7566_v52  ;;  %v6006_v52 = vsub.f32 %v5755_v62, %v5984_v7 }
  0x54   : > { %4727 = vmatprep.mubr.f32.mxu0 %v5635_v58  ;;  %4758 = vmatprep.mubr.f32.mxu1 %v7567_v53  ;;  %v5905_v58 = vand.u32 4294901760, %v5718_v48  ;;  %v6009_v53 = vand.u32 4294901760, %v5766_v38 }
  0x57   : > { %4728 = vmatmul.mubr.f32.gmra.mxu0 %v5652_v10  ;;  %4759 = vmatmul.mubr.f32.gmra.mxu1 %v7568_v36  ;;  %v6018_v36 = vsub.f32 %v5758_v57, %v5993_v43  ;;  %v6034_v57 = vand.u32 4294901760, %v5780_v4 }
  0x58   : > { %4730 = vmatprep.mubr.f32.mxu0 %v5668_v20  ;;  %4793 = vmatprep.mubr.f32.mxu1 %v5493_v21  ;;  %v5922_v20 = vand.u32 4294901760, %v5721_v63 }
  0x5b   : > { %4731 = vmatmul.mubr.f32.gmra.mxu0 %v5679_v54  ;;  %4794 = vmatmul.mubr.f32.vlgmr.msra.gmra.mxu1 %v5495_v22 }
  0x5c   : > { %4765 = vmatprep.mubr.f32.mxu0 %v5493_v21  ;;  %4846 = vmatpush3.msra.mxu1 %v1781_v9  ;;  %v5859_v21 = vand.u32 4294901760, %v5660_v13  ;;  %v5966_v9 = vand.u32 4294901760, %v5749_v12 }
  0x5d   : > { %4796 = vmatprep.mubr.f32.mxu1 %v5497_v23  ;;  %4847 = vmatprep.subr.mxu1 %v1788_v37 }
  0x5e   : > { %4848 = vmatpush3.msra.mxu1 %v1788_v37  ;;  %v5990_v41 = vsub.f32 %v5749_v12, %v5966_v9  ;;  %v6021_v37 = vand.u32 4294901760, %v5773_v26 }
  0x5f   : > { %4766 = vmatmul.mubr.f32.vlgmr.msra.gmra.mxu0 %v5495_v22  ;;  %4797 = vmatmul.mubr.f32.gmra.mxu1 %v5514_v33  ;;  %v5864_v22 = vand.u32 4294901760, %v5682_v59 }
  0x60   : > { %4818 = vmatpush3.msra.mxu0 %v5695_v55  ;;  %4768 = vmatprep.mubr.f32.mxu0 %v5497_v23  ;;  %v5870_v23 = vsub.f32 %v5660_v13, %v5859_v21  ;;  %v1690_v29 = vand.u32 4294901760, %v5990_v41 }
  0x61   : > { %4799 = vmatprep.mubr.f32.mxu1 %v5516_v34  ;;  %4819 = vmatprep.subr.mxu0 %v5804_v39 }
  0x62   : > { %4820 = vmatpush3.msra.mxu0 %v5804_v39  ;;  %4901 = vmatprep.subr.mxu1 %v5695_v55 }
  0x63   : > { %4769 = vmatmul.mubr.f32.gmra.mxu0 %v5514_v33  ;;  %4800 = vmatmul.mubr.f32.gmra.mxu1 %v5518_v35  ;;  %v5873_v33 = vand.u32 4294901760, %v5693_v56 }
  0x64   : > { %4771 = vmatprep.mubr.f32.mxu0 %v5516_v34  ;;  %4802 = vmatprep.mubr.f32.mxu1 %v5534_v44  ;;  %v5879_v34 = vsub.f32 %v5682_v59, %v5864_v22  ;;  %v5932_v59 = vsub.f32 %v5718_v48, %v5905_v58  ;;  %v5946_v48 = vsub.f32 %v5721_v63, %v5922_v20 }
  0x65   : > { %4873 = vmatprep.subr.mxu0 %v5725_v51 }
  0x66   : > { %v1650_v28 = vand.u32 4294901760, %v5932_v59  ;;  %v1660_v3 = vand.u32 4294901760, %v5946_v48 }
  0x67   : > { %4772 = vmatmul.mubr.f32.gmra.mxu0 %v5518_v35  ;;  %4803 = vmatmul.mubr.f32.gmra.mxu1 %v5536_v45  ;;  %v5882_v35 = vand.u32 4294901760, %v5698_v14 }
  0x68   : > { %4774 = vmatprep.mubr.f32.mxu0 %v5534_v44  ;;  %4805 = vmatprep.mubr.f32.mxu1 %v5587_v17  ;;  %v1590_v44 = vand.u32 4294901760, %v5870_v23 }
  0x69   : > { %v5902_v47 = vsub.f32 %v5698_v14, %v5882_v35 }
  0x6b   : > { %4775 = vmatmul.mubr.f32.gmra.mxu0 %v5536_v45  ;;  %4806 = vmatmul.mubr.f32.gmra.mxu1 %v5589_v18  ;;  %v5889_v45 = vsub.f32 %v5693_v56, %v5873_v33  ;;  %v1591_v56 = vsub.f32 %v5870_v23, %v1590_v44  ;;  %v1620_v54 = vand.u32 4294901760, %v5902_v47 }
  0x6c   : > { %4777 = vmatprep.mubr.f32.mxu0 %v5587_v17  ;;  %4808 = vmatprep.mubr.f32.mxu1 %v5591_v19  ;;  %v5892_v17 = vand.u32 4294901760, %v5708_v25 }
  0x6d   : > { %v1621_v1 = vsub.f32 %v5902_v47, %v1620_v54 }
  0x6e   : > { %v5915_v10 = vsub.f32 %v5708_v25, %v5892_v17 }
  0x6f   : > { %4778 = vmatmul.mubr.f32.gmra.mxu0 %v5589_v18  ;;  %4809 = vmatmul.mubr.f32.gmra.mxu1 %v5601_v6  ;;  %v5895_v18 = vand.u32 4294901760, %v5711_v0  ;;  %v1622_v31 = vand.u32 4294901760, %v1621_v1  ;;  %v1710_v1 = vand.u32 4294901760, %v6018_v36 }
  0x70   : > { %4780 = vmatprep.mubr.f32.mxu0 %v5591_v19  ;;  %4811 = vmatprep.mubr.f32.mxu1 %v5620_v46  ;;  %v1600_v19 = vand.u32 4294901760, %v5879_v34  ;;  %v1630_v14 = vand.u32 4294901760, %v5915_v10 }
  0x71   : > { %v5919_v13 = vsub.f32 %v5711_v0, %v5895_v18  ;;  %v1592_v0 = vand.u32 4294901760, %v1591_v56  ;;  %v1681_v56 = vsub.f32 %v5981_v8, %v1680_v49 }
  0x72   : > { %v1631_v63 = vsub.f32 %v5915_v10, %v1630_v14 }
  0x73   : > { %4781 = vmatmul.mubr.f32.gmra.mxu0 %v5601_v6  ;;  %4812 = vmatmul.mubr.f32.gmra.mxu1 %v5638_v60  ;;  %v1610_v6 = vand.u32 4294901760, %v5889_v45  ;;  %v1640_v25 = vand.u32 4294901760, %v5919_v13 }
  0x74   : > { %4783 = vmatprep.mubr.f32.mxu0 %v5620_v46  ;;  %4814 = vmatprep.mubr.f32.mxu1 %v5640_v61  ;;  %v1601_v46 = vsub.f32 %v5879_v34, %v1600_v19  ;;  %v1632_v32 = vand.u32 4294901760, %v1631_v63 }
  0x75   : > { %v1641_v30 = vsub.f32 %v5919_v13, %v1640_v25 }
  0x77   : > { %4784 = vmatmul.mubr.f32.gmra.mxu0 %v5638_v60  ;;  %4815 = vmatmul.mubr.f32.gmra.mxu1 %v5654_v11  ;;  %v1611_v60 = vsub.f32 %v5889_v45, %v1610_v6  ;;  %v1642_v16 = vand.u32 4294901760, %v1641_v30 }
  0x78   : > { %4786 = vmatprep.mubr.f32.mxu0 %v5640_v61  ;;  %4849 = vmatprep.mubr.f32.mxu1 %v5859_v21  ;;  %v1602_v61 = vand.u32 4294901760, %v1601_v46  ;;  %v1700_v46 = vand.u32 4294901760, %v6006_v52 }
  0x79   : > { %v1612_v15 = vand.u32 4294901760, %v1611_v60 }
  0x7a   : > { %v1701_v63 = vsub.f32 %v6006_v52, %v1700_v46 }
  0x7b   : > { %4787 = vmatmul.mubr.f32.gmra.mxu0 %v5654_v11  ;;  %4850 = vmatmul.mubr.f32.vlgmr.msra.gmra.mxu1 %v5864_v22  ;;  %v5963_v11 = vsub.f32 %v5734_v24, %v5941_v27  ;;  %v1651_v24 = vsub.f32 %v5932_v59, %v1650_v28 }
  0x7c   : > { %4821 = vmatprep.mubr.f32.mxu0 %v1592_v0  ;;  %4902 = vmatpush3.msra.mxu1 %v5695_v55  ;;  %v6031_v0 = vsub.f32 %v5766_v38, %v6009_v53  ;;  %v1682_v38 = vand.u32 4294901760, %v1681_v56 }
  0x7d   : > { %4852 = vmatprep.mubr.f32.mxu1 %v5873_v33  ;;  %4903 = vmatprep.subr.mxu1 %v5804_v39  ;;  %v1670_v40 = vand.u32 4294901760, %v5963_v11  ;;  %v1652_v12 = vand.u32 4294901760, %v1651_v24 }
  0x7e   : > { %4904 = vmatpush3.msra.mxu1 %v5804_v39  ;;  %v1720_v30 = vand.u32 4294901760, %v6031_v0 }
  0x7f   : > { %4822 = vmatmul.mubr.f32.vlgmr.msra.gmra.mxu0 %v1602_v61  ;;  %4853 = vmatmul.mubr.f32.gmra.mxu1 %v5882_v35  ;;  %v1691_v61 = vsub.f32 %v5990_v41, %v1690_v29 }
  0x80   : > { %4874 = vmatpush3.msra.mxu0 %v5725_v51  ;;  %4824 = vmatprep.mubr.f32.mxu0 %v1612_v15  ;;  %v1661_v51 = vsub.f32 %v5946_v48, %v1660_v3  ;;  %v6043_v15 = vsub.f32 %v5773_v26, %v6021_v37  ;;  %v1711_v26 = vsub.f32 %v6018_v36, %v1710_v1 }
  0x81   : > { %4855 = vmatprep.mubr.f32.mxu1 %v5892_v17  ;;  %4875 = vmatprep.subr.mxu0 %v5813_v42  ;;  %v1692_v24 = vand.u32 4294901760, %v1691_v61 }
  0x82   : > { %4876 = vmatpush3.msra.mxu0 %v5813_v42  ;;  %4957 = vmatprep.subr.mxu1 %v5695_v55  ;;  %v1671_v42 = vsub.f32 %v5963_v11, %v1670_v40  ;;  %v1662_v62 = vand.u32 4294901760, %v1661_v51  ;;  %v1721_v51 = vsub.f32 %v6031_v0, %v1720_v30 }
  0x83   : > { %4825 = vmatmul.mubr.f32.gmra.mxu0 %v1622_v31  ;;  %4856 = vmatmul.mubr.f32.gmra.mxu1 %v5895_v18  ;;  %v6052_v31 = vsub.f32 %v5780_v4, %v6034_v57 }
  0x84   : > { %4827 = vmatprep.mubr.f32.mxu0 %v1632_v32  ;;  %4858 = vmatprep.mubr.f32.mxu1 %v5905_v58  ;;  %v1672_v60 = vand.u32 4294901760, %v1671_v42  ;;  %v1730_v32 = vand.u32 4294901760, %v6043_v15  ;;  %v1712_v42 = vand.u32 4294901760, %v1711_v26 }
  0x85   : > { %4929 = vmatprep.subr.mxu0 %v5738_v5 }
  0x86   : > { %v1731_v4 = vsub.f32 %v6043_v15, %v1730_v32 }
  0x87   : > { %4828 = vmatmul.mubr.f32.gmra.mxu0 %v1642_v16  ;;  %4859 = vmatmul.mubr.f32.gmra.mxu1 %v5922_v20  ;;  %v1702_v16 = vand.u32 4294901760, %v1701_v63 }
  0x88   : > { %4830 = vmatprep.mubr.f32.mxu0 %v1652_v12  ;;  %4861 = vmatprep.mubr.f32.mxu1 %v5941_v27  ;;  %v1740_v12 = vand.u32 4294901760, %v6052_v31 }
  0x8a   : > { %v1741_v56 = vsub.f32 %v6052_v31, %v1740_v12 }
  0x8b   : > { %4831 = vmatmul.mubr.f32.gmra.mxu0 %v1662_v62  ;;  %4862 = vmatmul.mubr.f32.gmra.mxu1 %v5955_v2  ;;  %v1722_v62 = vand.u32 4294901760, %v1721_v51 }
  0x8c   : > { %4833 = vmatprep.mubr.f32.mxu0 %v1672_v60  ;;  %4864 = vmatprep.mubr.f32.mxu1 %v5966_v9  ;;  %v1732_v60 = vand.u32 4294901760, %v1731_v4  ;;  %v1742_v61 = vand.u32 4294901760, %v1741_v56  ;;  %v2704_v4 = vld [vmem:[%s7440_s5 + $0x40] sm:$0xff] }
  0x8f   : > { %4834 = vmatmul.mubr.f32.gmra.mxu0 %v1682_v38  ;;  %4865 = vmatmul.mubr.f32.gmra.mxu1 %v5984_v7 }
  0x90   : > { %4836 = vmatprep.mubr.f32.mxu0 %v1692_v24  ;;  %4867 = vmatprep.mubr.f32.mxu1 %v5993_v43 }
  0x93   : > { %4837 = vmatmul.mubr.f32.gmra.mxu0 %v1702_v16  ;;  %4868 = vmatmul.mubr.f32.gmra.mxu1 %v6009_v53 }
  0x94   : > { %4839 = vmatprep.mubr.f32.mxu0 %v1712_v42  ;;  %4870 = vmatprep.mubr.f32.mxu1 %v6021_v37 }
  0x97   : > { %4840 = vmatmul.mubr.f32.gmra.mxu0 %v1722_v62  ;;  %4871 = vmatmul.mubr.f32.gmra.mxu1 %v6034_v57 }
  0x98   : > { %4842 = vmatprep.mubr.f32.mxu0 %v1732_v60  ;;  %4905 = vmatprep.mubr.f32.mxu1 %v1590_v44  ;;  %v6272_v60 = vand.u32 4294901760, %v2704_v4 }
  0x9a   : > { %7589 = vst [vmem:[#allocation22_spill] sm:$0xff] %v6272_v60 }
  0x9b   : > { %4843 = vmatmul.mubr.f32.gmra.mxu0 %v1742_v61  ;;  %4906 = vmatmul.mubr.f32.vlgmr.msra.gmra.mxu1 %v1600_v19  ;;  %v2710_v19 = vld [vmem:[%s7440_s5 + $0x70] sm:$0xff] }
  0x9c   : > { %4877 = vmatprep.mubr.f32.mxu0 %v5870_v23  ;;  %4958 = vmatpush3.msra.mxu1 %v5695_v55 }
  0x9d   : > { %4908 = vmatprep.mubr.f32.mxu1 %v1610_v6  ;;  %4959 = vmatprep.subr.mxu1 %v5804_v39 }
  0x9e   : > { %4960 = vmatpush3.msra.mxu1 %v5804_v39 }
  0x9f   : > { %4878 = vmatmul.mubr.f32.vlgmr.msra.gmra.mxu0 %v5879_v34  ;;  %4909 = vmatmul.mubr.f32.gmra.mxu1 %v1620_v54 }
  0xa0   : > { %4930 = vmatpush3.msra.mxu0 %v5738_v5  ;;  %4880 = vmatprep.mubr.f32.mxu0 %v5889_v45 }
  0xa1   : > { %4911 = vmatprep.mubr.f32.mxu1 %v1630_v14  ;;  %4931 = vmatprep.subr.mxu0 %v5822_v50 }
  0xa2   : > { %4932 = vmatpush3.msra.mxu0 %v5822_v50 }
  0xa3   : > { %4881 = vmatmul.mubr.f32.gmra.mxu0 %v5902_v47  ;;  %4912 = vmatmul.mubr.f32.gmra.mxu1 %v1640_v25 }
  0xa4   : > { %4883 = vmatprep.mubr.f32.mxu0 %v5915_v10  ;;  %4914 = vmatprep.mubr.f32.mxu1 %v1650_v28 }
  0xa7   : > { %4884 = vmatmul.mubr.f32.gmra.mxu0 %v5919_v13  ;;  %4915 = vmatmul.mubr.f32.gmra.mxu1 %v1660_v3  ;;  %v2709_v13 = vld [vmem:[%s7440_s5 + $0x68] sm:$0xff] }
  0xa8   : > { %4886 = vmatprep.mubr.f32.mxu0 %v5932_v59  ;;  %4917 = vmatprep.mubr.f32.mxu1 %v1670_v40  ;;  %v6184_v14 = vand.u32 4294901760, %v2709_v13 }
  0xaa   : > { %7574 = vst [vmem:[#allocation7_spill] sm:$0xff] %v6184_v14 }
  0xab   : > { %4887 = vmatmul.mubr.f32.gmra.mxu0 %v5946_v48  ;;  %4918 = vmatmul.mubr.f32.gmra.mxu1 %v1680_v49  ;;  %v2708_v48 = vld [vmem:[%s7440_s5 + $0x60] sm:$0xff] }
  0xac   : > { %4889 = vmatprep.mubr.f32.mxu0 %v5963_v11  ;;  %4920 = vmatprep.mubr.f32.mxu1 %v1690_v29  ;;  %v6201_v11 = vsub.f32 %v2709_v13, %v6184_v14 }
  0xae   : > { %7576 = vst [vmem:[#allocation9_spill] sm:$0xff] %v6201_v11  ;;  %v6215_v49 = vand.u32 4294901760, %v6201_v11 }
  0xaf   : > { %4890 = vmatmul.mubr.f32.gmra.mxu0 %v5981_v8  ;;  %4921 = vmatmul.mubr.f32.gmra.mxu1 %v1700_v46  ;;  %v6204_v8 = vand.u32 4294901760, %v2708_v48 }
  0xb0   : > { %4892 = vmatprep.mubr.f32.mxu0 %v5990_v41  ;;  %4923 = vmatprep.mubr.f32.mxu1 %v1710_v1  ;;  %7578 = vst [vmem:[#allocation11_spill] sm:$0xff] %v6215_v49 }
  0xb1   : > { %7577 = vst [vmem:[#allocation10_spill] sm:$0xff] %v6204_v8  ;;  %v6222_v29 = vsub.f32 %v2708_v48, %v6204_v8 }
  0xb3   : > { %4893 = vmatmul.mubr.f32.gmra.mxu0 %v6006_v52  ;;  %4924 = vmatmul.mubr.f32.gmra.mxu1 %v1720_v30  ;;  %7579 = vst [vmem:[#allocation12_spill] sm:$0xff] %v6222_v29  ;;  %v6236_v38 = vand.u32 4294901760, %v6222_v29  ;;  %v2705_v30 = vld [vmem:[%s7440_s5 + $0x48] sm:$0xff] }
  0xb4   : > { %4895 = vmatprep.mubr.f32.mxu0 %v6018_v36  ;;  %4926 = vmatprep.mubr.f32.mxu1 %v1730_v32  ;;  %v6250_v32 = vand.u32 4294901760, %v2705_v30 }
  0xb5   : > { %7582 = vst [vmem:[#allocation15_spill] sm:$0xff] %v6236_v38 }
  0xb6   : > { %7585 = vst [vmem:[#allocation18_spill] sm:$0xff] %v6250_v32  ;;  %v6270_v56 = vsub.f32 %v2705_v30, %v6250_v32 }
  0xb7   : > { %4896 = vmatmul.mubr.f32.gmra.mxu0 %v6031_v0  ;;  %4927 = vmatmul.mubr.f32.gmra.mxu1 %v1740_v12  ;;  %v2971_v0 = vsub.f32 %v6201_v11, %v6215_v49  ;;  %v2978_v12 = vsub.f32 %v6222_v29, %v6236_v38  ;;  %v2698_v38 = vld [vmem:[%s7440_s5 + $0x10] sm:$0xff] }
  0xb8   : > { %4898 = vmatprep.mubr.f32.mxu0 %v6043_v15  ;;  %4961 = vmatprep.mubr.f32.mxu1 %v5859_v21  ;;  %7588 = vst [vmem:[#allocation21_spill] sm:$0xff] %v6270_v56 }
  0xb9   : > { %v2972_v24 = vand.u32 4294901760, %v2971_v0 }
  0xbb   : > { %4899 = vmatmul.mubr.f32.gmra.mxu0 %v6052_v31  ;;  %4962 = vmatmul.mubr.f32.vlgmr.msra.gmra.mxu1 %v5864_v22 }
  0xbc   : > { %4933 = vmatprep.mubr.f32.mxu0 %v5859_v21  ;;  %4964 = vmatprep.mubr.f32.mxu1 %v5873_v33 }
  0xbf   : > { %4934 = vmatmul.mubr.f32.vlgmr.msra.gmra.mxu0 %v5864_v22  ;;  %4965 = vmatmul.mubr.f32.gmra.mxu1 %v5882_v35 }
  0xc0   : > { %4936 = vmatprep.mubr.f32.mxu0 %v5873_v33  ;;  %4967 = vmatprep.mubr.f32.mxu1 %v5892_v17 }
  0xc3   : > { %4937 = vmatmul.mubr.f32.gmra.mxu0 %v5882_v35  ;;  %4968 = vmatmul.mubr.f32.gmra.mxu1 %v5895_v18  ;;  %v2711_v35 = vld [vmem:[%s7440_s5 + $0x78] sm:$0xff] }
  0xc4   : > { %4939 = vmatprep.mubr.f32.mxu0 %v5892_v17  ;;  %4970 = vmatprep.mubr.f32.mxu1 %v5905_v58  ;;  %v6157_v45 = vand.u32 4294901760, %v2711_v35 }
  0xc6   : > { %7569 = vst [vmem:[#allocation2_spill] sm:$0xff] %v6157_v45  ;;  %v6167_v47 = vsub.f32 %v2711_v35, %v6157_v45  ;;  %4985 = vmatprep.subr.mxu0 %v6157_v45 }
  0xc7   : > { %4940 = vmatmul.mubr.f32.gmra.mxu0 %v5895_v18  ;;  %4971 = vmatmul.mubr.f32.gmra.mxu1 %v5922_v20 }
  0xc8   : > { %4942 = vmatprep.mubr.f32.mxu0 %v5905_v58  ;;  %4973 = vmatprep.mubr.f32.mxu1 %v5941_v27  ;;  %7570 = vst [vmem:[#allocation3_spill] sm:$0xff] %v6167_v47  ;;  %v6169_v58 = vand.u32 4294901760, %v2710_v19  ;;  %v6179_v54 = vand.u32 4294901760, %v6167_v47 }
  0xc9   : > { %4986 = vmatpush3.msra.mxu0 %v6157_v45 }
  0xca   : > { %7571 = vst [vmem:[#allocation4_spill] sm:$0xff] %v6169_v58  ;;  %7572 = vst [vmem:[#allocation5_spill] sm:$0xff] %v6179_v54  ;;  %v6182_v59 = vsub.f32 %v2710_v19, %v6169_v58  ;;  %4987 = vmatprep.subr.mxu0 %v6169_v58  ;;  %v2957_v28 = vsub.f32 %v6167_v47, %v6179_v54  ;;  %v6286_v19 = vand.u32 4294901760, %v6270_v56 }
  0xcb   : > { %4943 = vmatmul.mubr.f32.gmra.mxu0 %v5922_v20  ;;  %4974 = vmatmul.mubr.f32.gmra.mxu1 %v5955_v2 }
  0xcc   : > { %4945 = vmatprep.mubr.f32.mxu0 %v5941_v27  ;;  %4976 = vmatprep.mubr.f32.mxu1 %v5966_v9  ;;  %7573 = vst [vmem:[#allocation6_spill] sm:$0xff] %v6182_v59  ;;  %v2958_v41 = vand.u32 4294901760, %v2957_v28  ;;  %7590 = vst [vmem:[#allocation23_spill] sm:$0xff] %v6286_v19 }
  0xcd   : > { %4988 = vmatpush3.msra.mxu0 %v6169_v58 }
  0xce   : > { %4989 = vmatprep.subr.mxu0 %v6184_v14  ;;  %5041 = vmatprep.subr.mxu1 %v2958_v41 }
  0xcf   : > { %4946 = vmatmul.mubr.f32.gmra.mxu0 %v5955_v2  ;;  %4977 = vmatmul.mubr.f32.gmra.mxu1 %v5984_v7  ;;  %v6198_v2 = vand.u32 4294901760, %v6182_v59 }
  0xd0   : > { %4948 = vmatprep.mubr.f32.mxu0 %v5966_v9  ;;  %4979 = vmatprep.mubr.f32.mxu1 %v5993_v43 }
  0xd1   : > { %7575 = vst [vmem:[#allocation8_spill] sm:$0xff] %v6198_v2  ;;  %4990 = vmatpush3.msra.mxu0 %v6184_v14  ;;  %5042 = vmatpush3.msra.mxu1 %v2958_v41 }
  0xd2   : > { %4991 = vmatprep.subr.mxu0 %v6204_v8 }
  0xd3   : > { %4949 = vmatmul.mubr.f32.gmra.mxu0 %v5984_v7  ;;  %4980 = vmatmul.mubr.f32.gmra.mxu1 %v6009_v53  ;;  %v2707_v7 = vld [vmem:[%s7440_s5 + $0x58] sm:$0xff] }
  0xd4   : > { %4951 = vmatprep.mubr.f32.mxu0 %v5993_v43  ;;  %4982 = vmatprep.mubr.f32.mxu1 %v6021_v37  ;;  %v2964_v43 = vsub.f32 %v6182_v59, %v6198_v2  ;;  %v6224_v36 = vand.u32 4294901760, %v2707_v7 }
  0xd5   : > { %4992 = vmatpush3.msra.mxu0 %v6204_v8 }
  0xd6   : > { %7580 = vst [vmem:[#allocation13_spill] sm:$0xff] %v6224_v36  ;;  %v2965_v46 = vand.u32 4294901760, %v2964_v43  ;;  %v6239_v63 = vsub.f32 %v2707_v7, %v6224_v36  ;;  %4993 = vmatprep.subr.mxu0 %v6224_v36  ;;  %v2999_v7 = vsub.f32 %v6270_v56, %v6286_v19  ;;  %v2699_v19 = vld [vmem:[%s7440_s5 + $0x18] sm:$0xff] }
  0xd7   : > { %4952 = vmatmul.mubr.f32.gmra.mxu0 %v6009_v53  ;;  %4983 = vmatmul.mubr.f32.gmra.mxu1 %v6034_v57 }
  0xd8   : > { %4954 = vmatprep.mubr.f32.mxu0 %v6021_v37  ;;  %v2706_v37 = vld [vmem:[%s7440_s5 + $0x50] sm:$0xff]  ;;  %7583 = vst [vmem:[#allocation16_spill] sm:$0xff] %v6239_v63  ;;  %5043 = vmatprep.subr.mxu1 %v2965_v46  ;;  %v6260_v42 = vand.u32 4294901760, %v6239_v63  ;;  %v3000_v30 = vand.u32 4294901760, %v2999_v7 }
  0xd9   : > { %4994 = vmatpush3.msra.mxu0 %v6224_v36  ;;  %5044 = vmatpush3.msra.mxu1 %v2965_v46 }
  0xda   : > { %7586 = vst [vmem:[#allocation19_spill] sm:$0xff] %v6260_v42  ;;  %5045 = vmatprep.subr.mxu1 %v2972_v24 }
  0xdb   : > { %4955 = vmatmul.mubr.f32.gmra.mxu0 %v6034_v57  ;;  %v4683_v55 = vpop.f32.mrf.mxu1  ;;  %v6232_v57 = vand.u32 4294901760, %v2706_v37  ;;  %5046 = vmatpush3.msra.mxu1 %v2972_v24 }
  0xdd   : > { %v6144_v5 = vpop.f32.mrf.mxu1  ;;  %7581 = vst [vmem:[#allocation14_spill] sm:$0xff] %v6232_v57  ;;  %v6248_v26 = vsub.f32 %v2706_v37, %v6232_v57  ;;  %4995 = vmatprep.subr.mxu0 %v6232_v57 }
  0xde   : > { %v4655_v39 = vpop.f32.mrf.mxu0  ;;  %4996 = vmatpush3.msra.mxu0 %v6232_v57 }
  0xdf   : > { %v4686_v50 = vpop.f32.mrf.mxu1  ;;  %v6146_v21 = vadd.f32 %v4683_v55, %v4655_v39  ;;  %7584 = vst [vmem:[#allocation17_spill] sm:$0xff] %v6248_v26  ;;  %v6267_v62 = vand.u32 4294901760, %v6248_v26  ;;  %v2979_v39 = vand.u32 4294901760, %v2978_v12  ;;  %4997 = vmatprep.subr.mxu0 %v6250_v32 }
  0xe0   : > { %v6148_v22 = vpop.f32.mrf.mxu0  ;;  %4998 = vmatpush3.msra.mxu0 %v6250_v32 }
  0xe1   : > { %v6150_v23 = vpop.f32.mrf.mxu1  ;;  %7587 = vst [vmem:[#allocation20_spill] sm:$0xff] %v6267_v62  ;;  %v2992_v35 = vsub.f32 %v6248_v26, %v6267_v62  ;;  %5047 = vmatprep.subr.mxu1 %v2979_v39  ;;  %4999 = vmatprep.subr.mxu0 %v6272_v60 }
  0xe2   : > { %5048 = vmatpush3.msra.mxu1 %v2979_v39  ;;  %5000 = vmatpush3.msra.mxu0 %v6272_v60 }
  0xe3   : > { %v4658_v33 = vpop.f32.mrf.mxu0  ;;  %v4689_v34 = vpop.f32.mrf.mxu1 }
  0xe4   : > { %v6155_v44 = vadd.f32 %v4686_v50, %v4658_v33  ;;  %v2985_v50 = vsub.f32 %v6239_v63, %v6260_v42  ;;  %v2703_v33 = vld [vmem:[%s7440_s5 + $0x38] sm:$0xff] }
  0xe5   : > { %v6159_v17 = vpop.f32.mrf.mxu0  ;;  %v6161_v18 = vpop.f32.mrf.mxu1  ;;  %v6296_v28 = vand.u32 4294901760, %v2703_v33 }
  0xe6   : > { %v2986_v48 = vand.u32 4294901760, %v2985_v50  ;;  %v2700_v50 = vld [vmem:[%s7440_s5 + $0x20] sm:$0xff] }
  0xe7   : > { %v4661_v6 = vpop.f32.mrf.mxu0  ;;  %v4692_v10 = vpop.f32.mrf.mxu1  ;;  %7592 = vst [vmem:[#allocation25_spill] sm:$0xff] %v6296_v28  ;;  %v6309_v46 = vsub.f32 %v2703_v33, %v6296_v28  ;;  %5001 = vmatprep.subr.mxu0 %v6296_v28 }
  0xe8   : > { %v6176_v20 = vadd.f32 %v4689_v34, %v4661_v6  ;;  %v6289_v6 = vsub.f32 %v2704_v4, %v6272_v60  ;;  %5049 = vmatprep.subr.mxu1 %v2986_v48  ;;  %5002 = vmatpush3.msra.mxu0 %v6296_v28 }
  0xe9   : > { %v6187_v27 = vpop.f32.mrf.mxu0  ;;  %v6189_v25 = vpop.f32.mrf.mxu1  ;;  %7594 = vst [vmem:[#allocation27_spill] sm:$0xff] %v6309_v46  ;;  %5050 = vmatpush3.msra.mxu1 %v2986_v48  ;;  %v6329_v39 = vand.u32 4294901760, %v6309_v46  ;;  %v6341_v48 = vand.u32 4294901760, %v2700_v50 }
  0xea   : > { %7591 = vst [vmem:[#allocation24_spill] sm:$0xff] %v6289_v6  ;;  %v6305_v41 = vand.u32 4294901760, %v6289_v6 }
  0xeb   : > { %v4664_v9 = vpop.f32.mrf.mxu0  ;;  %v4695_v3 = vpop.f32.mrf.mxu1  ;;  %7597 = vst [vmem:[#allocation30_spill] sm:$0xff] %v6329_v39  ;;  %7600 = vst [vmem:[#allocation33_spill] sm:$0xff] %v6341_v48 }
  0xec   : > { %v6210_v40 = vadd.f32 %v4692_v10, %v4664_v9  ;;  %v2702_v9 = vld [vmem:[%s7440_s5 + $0x30] sm:$0xff]  ;;  %7593 = vst [vmem:[#allocation26_spill] sm:$0xff] %v6305_v41  ;;  %v3006_v24 = vsub.f32 %v6289_v6, %v6305_v41 }
  0xed   : > { %v6217_v52 = vpop.f32.mrf.mxu0  ;;  %v6219_v53 = vpop.f32.mrf.mxu1  ;;  %v6311_v0 = vand.u32 4294901760, %v2702_v9 }
  0xee   : > { %v3007_v33 = vand.u32 4294901760, %v3006_v24  ;;  %v6356_v24 = vsub.f32 %v2700_v50, %v6341_v48 }
  0xef   : > { %v4667_v1 = vpop.f32.mrf.mxu0  ;;  %v4698_v15 = vpop.f32.mrf.mxu1  ;;  %7595 = vst [vmem:[#allocation28_spill] sm:$0xff] %v6311_v0  ;;  %5003 = vmatprep.subr.mxu0 %v6311_v0 }
  0xf0   : > { %v6245_v31 = vadd.f32 %v4695_v3, %v4667_v1  ;;  %v2993_v3 = vand.u32 4294901760, %v2992_v35  ;;  %v2701_v1 = vld [vmem:[%s7440_s5 + $0x28] sm:$0xff]  ;;  %5004 = vmatpush3.msra.mxu0 %v6311_v0  ;;  %7603 = vst [vmem:[#allocation36_spill] sm:$0xff] %v6356_v24  ;;  %v6374_v42 = vand.u32 4294901760, %v6356_v24 }
  0xf1   : > { %v6253_v16 = vpop.f32.mrf.mxu0  ;;  %v6255_v51 = vpop.f32.mrf.mxu1  ;;  %v6321_v12 = vand.u32 4294901760, %v2701_v1 }
  0xf2   : > { %5051 = vmatprep.subr.mxu1 %v2993_v3  ;;  %7605 = vst [vmem:[#allocation38_spill] sm:$0xff] %v6374_v42 }
  0xf3   : > { %v4670_v61 = vpop.f32.mrf.mxu0  ;;  %v4701_v55 = vpop.f32.mrf.mxu1  ;;  %7596 = vst [vmem:[#allocation29_spill] sm:$0xff] %v6321_v12  ;;  %5052 = vmatpush3.msra.mxu1 %v2993_v3  ;;  %v6339_v35 = vsub.f32 %v2701_v1, %v6321_v12  ;;  %5005 = vmatprep.subr.mxu0 %v6321_v12 }
  0xf4   : > { %v6281_v34 = vadd.f32 %v4698_v15, %v4670_v61  ;;  %5053 = vmatprep.subr.mxu1 %v3000_v30  ;;  %5006 = vmatpush3.msra.mxu0 %v6321_v12 }
  0xf5   : > { %v6292_v10 = vpop.f32.mrf.mxu0  ;;  %v6294_v13 = vpop.f32.mrf.mxu1  ;;  %7599 = vst [vmem:[#allocation32_spill] sm:$0xff] %v6339_v35  ;;  %5054 = vmatpush3.msra.mxu1 %v3000_v30  ;;  %v6353_v1 = vand.u32 4294901760, %v6339_v35  ;;  %5007 = vmatprep.subr.mxu0 %v6341_v48 }
  0xf6   : > { %5055 = vmatprep.subr.mxu1 %v3007_v33  ;;  %5008 = vmatpush3.msra.mxu0 %v6341_v48 }
  0xf7   : > { %v4673_v43 = vpop.f32.mrf.mxu0  ;;  %v4704_v37 = vpop.f32.mrf.mxu1  ;;  %7602 = vst [vmem:[#allocation35_spill] sm:$0xff] %v6353_v1  ;;  %5056 = vmatpush3.msra.mxu1 %v3007_v33  ;;  %v3027_v50 = vsub.f32 %v6339_v35, %v6353_v1  ;;  %v6383_v33 = vand.u32 4294901760, %v2698_v38  ;;  %v3034_v35 = vsub.f32 %v6356_v24, %v6374_v42  ;;  %v2696_v42 = vld [vmem:[%s7440_s5] sm:$0xff] }
  0xf8   : > { %v6317_v15 = vadd.f32 %v4701_v55, %v4673_v43  ;;  %v6332_v55 = vsub.f32 %v2702_v9, %v6311_v0  ;;  %v3013_v9 = vsub.f32 %v6309_v46, %v6329_v39 }
  0xf9   : > { %v6324_v4 = vpop.f32.mrf.mxu0  ;;  %v6326_v61 = vpop.f32.mrf.mxu1  ;;  %7607 = vst [vmem:[#allocation40_spill] sm:$0xff] %v6383_v33  ;;  %v3028_v54 = vand.u32 4294901760, %v3027_v50 }
  0xfa   : > { %7598 = vst [vmem:[#allocation31_spill] sm:$0xff] %v6332_v55  ;;  %v6347_v41 = vand.u32 4294901760, %v6332_v55 }
  0xfb   : > { %v4676_v7 = vpop.f32.mrf.mxu0  ;;  %v4739_v43 = vpop.f32.mrf.mxu1 }
  0xfc   : > { %7601 = vst [vmem:[#allocation34_spill] sm:$0xff] %v6347_v41  ;;  %v6350_v3 = vadd.f32 %v4704_v37, %v4676_v7  ;;  %v3014_v37 = vand.u32 4294901760, %v3013_v9  ;;  %v3020_v30 = vsub.f32 %v6332_v55, %v6347_v41  ;;  %v6368_v7 = vand.u32 4294901760, %v2699_v19  ;;  %v2697_v55 = vld [vmem:[%s7440_s5 + $0x8] sm:$0xff] }
  0xfd   : > { %v6362_v39 = vpop.f32.mrf.mxu0  ;;  %v6364_v62 = vpop.f32.mrf.mxu1 }
  0xfe   : > { %7604 = vst [vmem:[#allocation37_spill] sm:$0xff] %v6368_v7  ;;  %5057 = vmatprep.subr.mxu1 %v3014_v37  ;;  %v3021_v41 = vand.u32 4294901760, %v3020_v30  ;;  %v6381_v2 = vsub.f32 %v2699_v19, %v6368_v7  ;;  %5009 = vmatprep.subr.mxu0 %v6368_v7 }
  0xff   : > { %v4711_v9 = vpop.f32.mrf.mxu0  ;;  %v4742_v49 = vpop.f32.mrf.mxu1  ;;  %5058 = vmatpush3.msra.mxu1 %v3014_v37  ;;  %5010 = vmatpush3.msra.mxu0 %v6368_v7  ;;  %v6403_v37 = vand.u32 4294901760, %v2697_v55 }
 0x100   : > { %7606 = vst [vmem:[#allocation39_spill] sm:$0xff] %v6381_v2  ;;  %v844_v1 = vadd.f32 %v4711_v9, %v6146_v21  ;;  %5059 = vmatprep.subr.mxu1 %v3021_v41  ;;  %v6398_v46 = vand.u32 4294901760, %v6381_v2  ;;  %v6401_v21 = vsub.f32 %v2698_v38, %v6383_v33  ;;  %5011 = vmatprep.subr.mxu0 %v6383_v33  ;;  %v3035_v9 = vand.u32 4294901760, %v3034_v35 }
 0x101   : > { %v6393_v30 = vpop.f32.mrf.mxu0  ;;  %v6395_v19 = vpop.f32.mrf.mxu1  ;;  %7610 = vst [vmem:[#allocation43_spill] sm:$0xff] %v6403_v37  ;;  %5060 = vmatpush3.msra.mxu1 %v3021_v41  ;;  %5012 = vmatpush3.msra.mxu0 %v6383_v33  ;;  %v6420_v41 = vand.u32 4294901760, %v2696_v42 }
 0x102   : > { %7608 = vst [vmem:[#allocation41_spill] sm:$0xff] %v6398_v46  ;;  %7609 = vst [vmem:[#allocation42_spill] sm:$0xff] %v6401_v21  ;;  %v6406_v50 = vadd.f32 %v4739_v43, %v844_v1  ;;  %5061 = vmatprep.subr.mxu1 %v3028_v54  ;;  %v3041_v38 = vsub.f32 %v6381_v2, %v6398_v46  ;;  %v6415_v48 = vand.u32 4294901760, %v6401_v21  ;;  %5013 = vmatprep.subr.mxu0 %v6403_v37 }
 0x103   : > { %v4714_v24 = vpop.f32.mrf.mxu0  ;;  %v4745_v7 = vpop.f32.mrf.mxu1  ;;  %v6418_v43 = vsub.f32 %v2697_v55, %v6403_v37  ;;  %7613 = vst [vmem:[#allocation46_spill] sm:$0xff] %v6420_v41  ;;  %5062 = vmatpush3.msra.mxu1 %v3028_v54  ;;  %5014 = vmatpush3.msra.mxu0 %v6403_v37  ;;  %v6435_v6 = vsub.f32 %v2696_v42, %v6420_v41 }
 0x104   : > { %7611 = vst [vmem:[#allocation44_spill] sm:$0xff] %v6415_v48  ;;  %v858_v35 = vadd.f32 %v4714_v24, %v6155_v44  ;;  %5063 = vmatprep.subr.mxu1 %v3035_v9  ;;  %v3042_v46 = vand.u32 4294901760, %v3041_v38  ;;  %v3048_v2 = vsub.f32 %v6401_v21, %v6415_v48  ;;  %5015 = vmatprep.subr.mxu0 %v6420_v41 }
 0x105   : > { %7612 = vst [vmem:[#allocation45_spill] sm:$0xff] %v6418_v43  ;;  %v6425_v1 = vpop.f32.mrf.mxu0  ;;  %v6427_v33 = vpop.f32.mrf.mxu1  ;;  %v6432_v55 = vand.u32 4294901760, %v6418_v43  ;;  %7615 = vst [vmem:[#allocation48_spill] sm:$0xff] %v6435_v6  ;;  %5064 = vmatpush3.msra.mxu1 %v3035_v9  ;;  %5016 = vmatpush3.msra.mxu0 %v6420_v41  ;;  %v6444_v21 = vand.u32 4294901760, %v6435_v6 }
 0x106   : > { %v6438_v44 = vadd.f32 %v4742_v49, %v858_v35  ;;  %5065 = vmatprep.subr.mxu1 %v3042_v46  ;;  %v3049_v38 = vand.u32 4294901760, %v3048_v2  ;;  %5097 = vmatprep.subr.mxu0 %v6167_v47 }
 0x107   : > { %7614 = vst [vmem:[#allocation47_spill] sm:$0xff] %v6432_v55  ;;  %v4717_v54 = vpop.f32.mrf.mxu0  ;;  %v4748_v24 = vpop.f32.mrf.mxu1  ;;  %v3055_v48 = vsub.f32 %v6418_v43, %v6432_v55  ;;  %7616 = vst [vmem:[#allocation49_spill] sm:$0xff] %v6444_v21  ;;  %5066 = vmatpush3.msra.mxu1 %v3042_v46  ;;  %v3062_v41 = vsub.f32 %v6435_v6, %v6444_v21 }
 0x108   : > { %v872_v42 = vadd.f32 %v4717_v54, %v6176_v20  ;;  %5067 = vmatprep.subr.mxu1 %v3049_v38 }
 0x109   : > { %v864_v49 = vpop.f32.mrf.mxu0  ;;  %v6448_v35 = vpop.f32.mrf.mxu1  ;;  %v3056_v9 = vand.u32 4294901760, %v3055_v48  ;;  %5068 = vmatpush3.msra.mxu1 %v3049_v38  ;;  %v3063_v37 = vand.u32 4294901760, %v3062_v41 }
 0x10a   : > { %v6452_v2 = vadd.f32 %v4745_v7, %v872_v42 }
 0x10b   : > { %v4720_v55 = vpop.f32.mrf.mxu0  ;;  %v4751_v43 = vpop.f32.mrf.mxu1  ;;  %5069 = vmatprep.subr.mxu1 %v3056_v9 }
 0x10c   : > { %v886_v12 = vadd.f32 %v4720_v55, %v6210_v40  ;;  %5070 = vmatpush3.msra.mxu1 %v3056_v9 }
 0x10d   : > { %v878_v20 = vpop.f32.mrf.mxu0  ;;  %v6455_v46 = vpop.f32.mrf.mxu1  ;;  %5071 = vmatprep.subr.mxu1 %v3063_v37 }
 0x10e   : > { %v6457_v54 = vadd.f32 %v4748_v24, %v886_v12  ;;  %5072 = vmatpush3.msra.mxu1 %v3063_v37 }
 0x10f   : > { %v4723_v48 = vpop.f32.mrf.mxu0  ;;  %v4754_v56 = vpop.f32.mrf.mxu1  ;;  %5153 = vmatprep.subr.mxu1 %v6157_v45 }
 0x110   : > { %v900_v7 = vadd.f32 %v4723_v48, %v6245_v31 }
 0x111   : > { %v892_v38 = vpop.f32.mrf.mxu0  ;;  %v6461_v42 = vpop.f32.mrf.mxu1 }
 0x112   : > { %v6463_v41 = vadd.f32 %v4751_v43, %v900_v7  ;;  %v671_v43 = vadd.f32 %v6144_v5, %v6148_v22 }
 0x113   : > { %v4726_v40 = vpop.f32.mrf.mxu0  ;;  %v4757_v55 = vpop.f32.mrf.mxu1 }
 0x114   : > { %v914_v9 = vadd.f32 %v4726_v40, %v6281_v34  ;;  %v837_v26 = vadd.f32 %v6393_v30, %v671_v43 }
 0x115   : > { %v6466_v21 = vpop.f32.mrf.mxu0  ;;  %v6468_v12 = vpop.f32.mrf.mxu1 }
 0x116   : > { %v6470_v37 = vadd.f32 %v4754_v56, %v914_v9  ;;  %v1017_v5 = vadd.f32 %v6364_v62, %v837_v26 }
 0x117   : > { %v4729_v24 = vpop.f32.mrf.mxu0  ;;  %v4760_v6 = vpop.f32.mrf.mxu1 }
 0x118   : > { %v928_v0 = vadd.f32 %v4729_v24, %v6317_v15  ;;  %v683_v15 = vadd.f32 %v6150_v23, %v6159_v17 }
 0x119   : > { %v6473_v31 = vpop.f32.mrf.mxu0  ;;  %v6475_v48 = vpop.f32.mrf.mxu1 }
 0x11a   : > { %v6479_v7 = vadd.f32 %v4757_v55, %v928_v0  ;;  %v851_v22 = vadd.f32 %v6425_v1, %v683_v15 }
 0x11b   : > { %v4732_v34 = vpop.f32.mrf.mxu0  ;;  %v4795_v40 = vpop.f32.mrf.mxu1 }
 0x11c   : > { %v942_v56 = vadd.f32 %v4732_v34, %v6350_v3  ;;  %v695_v3 = vadd.f32 %v6161_v18, %v6187_v27  ;;  %v1033_v17 = vadd.f32 %v6395_v19, %v851_v22 }
 0x11d   : > { %v6483_v9 = vpop.f32.mrf.mxu0  ;;  %v1376_v63 = vpop.f32.mrf.mxu1 }
 0x11e   : > { %v6487_v24 = vadd.f32 %v4760_v6, %v942_v56  ;;  %v865_v6 = vadd.f32 %v864_v49, %v695_v3 }
 0x11f   : > { %v4767_v28 = vpop.f32.mrf.mxu0  ;;  %v4798_v29 = vpop.f32.mrf.mxu1 }
 0x120   : > { %v1220_v0 = vadd.f32 %v4767_v28, %v6406_v50  ;;  %v707_v28 = vadd.f32 %v6189_v25, %v6217_v52  ;;  %v1049_v15 = vadd.f32 %v6427_v33, %v865_v6 }
 0x121   : > { %v1213_v55 = vpop.f32.mrf.mxu0  ;;  %v1388_v30 = vpop.f32.mrf.mxu1 }
 0x122   : > { %v6494_v43 = vadd.f32 %v4795_v40, %v1220_v0  ;;  %v1214_v34 = vadd.f32 %v1213_v55, %v1017_v5  ;;  %v879_v5 = vadd.f32 %v878_v20, %v707_v28 }
 0x123   : > { %v4770_v60 = vpop.f32.mrf.mxu0  ;;  %v4801_v23 = vpop.f32.mrf.mxu1 }
 0x124   : > { %v6497_v56 = vadd.f32 %v1376_v63, %v1214_v34  ;;  %v1232_v26 = vadd.f32 %v4770_v60, %v6438_v44  ;;  %v719_v60 = vadd.f32 %v6219_v53, %v6253_v16  ;;  %v1065_v22 = vadd.f32 %v6448_v35, %v879_v5 }
 0x125   : > { %v1225_v62 = vpop.f32.mrf.mxu0  ;;  %v1400_v1 = vpop.f32.mrf.mxu1 }
 0x126   : > { %v6502_v50 = vadd.f32 %v4798_v29, %v1232_v26  ;;  %v1226_v18 = vadd.f32 %v1225_v62, %v1033_v17  ;;  %v893_v55 = vadd.f32 %v892_v38, %v719_v60 }
 0x127   : > { %v4773_v27 = vpop.f32.mrf.mxu0  ;;  %v4804_v40 = vpop.f32.mrf.mxu1 }
 0x128   : > { %v6505_v0 = vadd.f32 %v1388_v30, %v1226_v18  ;;  %v1244_v63 = vadd.f32 %v4773_v27, %v6452_v2  ;;  %v731_v2 = vadd.f32 %v6255_v51, %v6292_v10 }
 0x129   : > { %v1237_v19 = vpop.f32.mrf.mxu0  ;;  %v1412_v49 = vpop.f32.mrf.mxu1 }
 0x12a   : > { %v6510_v44 = vadd.f32 %v4801_v23, %v1244_v63  ;;  %v1238_v25 = vadd.f32 %v1237_v19, %v1049_v15  ;;  %v1081_v23 = vadd.f32 %v6455_v46, %v893_v55  ;;  %v907_v6 = vadd.f32 %v6466_v21, %v731_v2 }
 0x12b   : > { %v4776_v52 = vpop.f32.mrf.mxu0  ;;  %v4807_v29 = vpop.f32.mrf.mxu1 }
 0x12c   : > { %v6513_v3 = vadd.f32 %v1400_v1, %v1238_v25  ;;  %v1256_v33 = vadd.f32 %v4776_v52, %v6457_v54  ;;  %v743_v54 = vadd.f32 %v6294_v13, %v6324_v4  ;;  %v1097_v18 = vadd.f32 %v6461_v42, %v907_v6 }
 0x12d   : > { %v1249_v20 = vpop.f32.mrf.mxu0  ;;  %v1424_v30 = vpop.f32.mrf.mxu1 }
 0x12e   : > { %v1419_v34 = vadd.f32 %v4804_v40, %v1256_v33  ;;  %v1250_v17 = vadd.f32 %v1249_v20, %v1065_v22  ;;  %v921_v27 = vadd.f32 %v6473_v31, %v743_v54 }
 0x12f   : > { %v4779_v53 = vpop.f32.mrf.mxu0  ;;  %v4810_v16 = vpop.f32.mrf.mxu1 }
 0x130   : > { %v6520_v26 = vadd.f32 %v1412_v49, %v1250_v17  ;;  %v1268_v35 = vadd.f32 %v4779_v53, %v6463_v41  ;;  %v755_v41 = vadd.f32 %v6326_v61, %v6362_v39  ;;  %v1113_v19 = vadd.f32 %v6468_v12, %v921_v27 }
 0x131   : > { %v1261_v38 = vpop.f32.mrf.mxu0  ;;  %v1436_v62 = vpop.f32.mrf.mxu1 }
 0x132   : > { %v1431_v1 = vadd.f32 %v4807_v29, %v1268_v35  ;;  %v1262_v28 = vadd.f32 %v1261_v38, %v1081_v23  ;;  %v935_v49 = vadd.f32 %v6483_v9, %v755_v41 }
 0x133   : > { %v4782_v51 = vpop.f32.mrf.mxu0  ;;  %v4813_v10 = vpop.f32.mrf.mxu1 }
 0x134   : > { %v6527_v46 = vadd.f32 %v1424_v30, %v1262_v28  ;;  %v1280_v21 = vadd.f32 %v4782_v51, %v6470_v37  ;;  %v1129_v61 = vadd.f32 %v6475_v48, %v935_v49 }
 0x135   : > { %v1273_v40 = vpop.f32.mrf.mxu0  ;;  %v1448_v15 = vpop.f32.mrf.mxu1 }
 0x136   : > { %v1443_v5 = vadd.f32 %v4810_v16, %v1280_v21  ;;  %v1274_v63 = vadd.f32 %v1273_v40, %v1097_v18 }
 0x137   : > { %v4785_v13 = vpop.f32.mrf.mxu0  ;;  %v4816_v4 = vpop.f32.mrf.mxu1 }
 0x138   : > { %v6534_v42 = vadd.f32 %v1436_v62, %v1274_v63  ;;  %v1292_v31 = vadd.f32 %v4785_v13, %v6479_v7 }
 0x139   : > { %v1285_v60 = vpop.f32.mrf.mxu0  ;;  %v1460_v25 = vpop.f32.mrf.mxu1 }
 0x13a   : > { %v1455_v37 = vadd.f32 %v4813_v10, %v1292_v31  ;;  %v1286_v52 = vadd.f32 %v1285_v60, %v1113_v19 }
 0x13b   : > { %v4788_v29 = vpop.f32.mrf.mxu0  ;;  %v6537_v22 = vpop.f32.mrf.mxu1 }
 0x13c   : > { %v6540_v39 = vadd.f32 %v1448_v15, %v1286_v52  ;;  %v1304_v55 = vadd.f32 %v4788_v29, %v6487_v24 }
 0x13d   : > { %v1297_v12 = vpop.f32.mrf.mxu0  ;;  %v6543_v33 = vpop.f32.mrf.mxu1 }
 0x13e   : > { %v1467_v9 = vadd.f32 %v4816_v4, %v1304_v55  ;;  %v1298_v20 = vadd.f32 %v1297_v12, %v1129_v61 }
 0x13f   : > { %v6545_v30 = vpop.f32.mrf.mxu0  ;;  %v6547_v7 = vpop.f32.mrf.mxu1 }
 0x140   : > { %v1461_v2 = vadd.f32 %v1460_v25, %v1298_v20  ;;  %v1605_v8 = vadd.f32 %v6545_v30, %v6494_v43 }
 0x141   : > { %v6549_v17 = vpop.f32.mrf.mxu0  ;;  %v6551_v53 = vpop.f32.mrf.mxu1 }
 0x142   : > { %v1595_v45 = vadd.f32 %v6549_v17, %v6497_v56 }
 0x143   : > { %v6553_v16 = vpop.f32.mrf.mxu0  ;;  %v6555_v48 = vpop.f32.mrf.mxu1 }
 0x145   : > { %v6557_v23 = vpop.f32.mrf.mxu0  ;;  %v6559_v24 = vpop.f32.mrf.mxu1 }
 0x147   : > { %v6561_v6 = vpop.f32.mrf.mxu0  ;;  %v4860_v35 = vpop.f32.mrf.mxu1 }
 0x148   : > { %v1645_v43 = vadd.f32 %v6561_v6, %v6510_v44 }
 0x149   : > { %v6563_v38 = vpop.f32.mrf.mxu0  ;;  %v6565_v62 = vpop.f32.mrf.mxu1 }
 0x14a   : > { %v1635_v30 = vadd.f32 %v6563_v38, %v6513_v3  ;;  %v1856_v3 = vadd.f32 %v6555_v48, %v1645_v43 }
 0x14b   : > { %v4832_v54 = vpop.f32.mrf.mxu0  ;;  %v4863_v28 = vpop.f32.mrf.mxu1 }
 0x14c   : > { %v1665_v51 = vadd.f32 %v4832_v54, %v1419_v34  ;;  %v1850_v38 = vadd.f32 %v6559_v24, %v1635_v30 }
 0x14d   : > { %v1654_v10 = vpop.f32.mrf.mxu0  ;;  %v6567_v18 = vpop.f32.mrf.mxu1 }
 0x14e   : > { %v6569_v27 = vadd.f32 %v4860_v35, %v1665_v51 }
 0x14f   : > { %v4835_v21 = vpop.f32.mrf.mxu0  ;;  %v4866_v40 = vpop.f32.mrf.mxu1 }
 0x150   : > { %v1685_v15 = vadd.f32 %v4835_v21, %v1431_v1 }
 0x151   : > { %v1674_v41 = vpop.f32.mrf.mxu0  ;;  %v6571_v63 = vpop.f32.mrf.mxu1 }
 0x152   : > { %v6573_v13 = vadd.f32 %v4863_v28, %v1685_v15 }
 0x153   : > { %v4838_v4 = vpop.f32.mrf.mxu0  ;;  %v4869_v19 = vpop.f32.mrf.mxu1 }
 0x154   : > { %v1705_v49 = vadd.f32 %v4838_v4, %v1443_v5 }
 0x155   : > { %v1694_v31 = vpop.f32.mrf.mxu0  ;;  %v6575_v60 = vpop.f32.mrf.mxu1 }
 0x156   : > { %v6577_v34 = vadd.f32 %v4866_v40, %v1705_v49 }
 0x157   : > { %v4841_v25 = vpop.f32.mrf.mxu0  ;;  %v4872_v52 = vpop.f32.mrf.mxu1 }
 0x158   : > { %v1725_v29 = vadd.f32 %v4841_v25, %v1455_v37 }
 0x159   : > { %v1714_v61 = vpop.f32.mrf.mxu0  ;;  %v1909_v55 = vpop.f32.mrf.mxu1 }
 0x15a   : > { %v6579_v12 = vadd.f32 %v4869_v19, %v1725_v29 }
 0x15b   : > { %v4844_v1 = vpop.f32.mrf.mxu0  ;;  %v4907_v20 = vpop.f32.mrf.mxu1 }
 0x15c   : > { %v1745_v35 = vadd.f32 %v4844_v1, %v1467_v9 }
 0x15d   : > { %v1734_v54 = vpop.f32.mrf.mxu0  ;;  %v6581_v28 = vpop.f32.mrf.mxu1 }
 0x15e   : > { %v6583_v51 = vadd.f32 %v4872_v52, %v1745_v35  ;;  %v1735_v5 = vadd.f32 %v1734_v54, %v1461_v2 }
 0x15f   : > { %v4879_v21 = vpop.f32.mrf.mxu0  ;;  %v6585_v15 = vpop.f32.mrf.mxu1 }
 0x160   : > { %7617 = vst [vmem:[#allocation50_spill] sm:$0xff] %v6583_v51  ;;  %v6587_v40 = vadd.f32 %v1909_v55, %v1735_v5 }
 0x161   : > { %v1991_v4 = vpop.f32.mrf.mxu0  ;;  %v6589_v37 = vpop.f32.mrf.mxu1 }
 0x162   : > { %7618 = vst [vmem:[#allocation51_spill] sm:$0xff] %v6587_v40  ;;  %v1625_v40 = vadd.f32 %v6553_v16, %v6502_v50  ;;  %v1826_v50 = vadd.f32 %v6543_v33, %v1595_v45  ;;  %v1675_v16 = vadd.f32 %v1674_v41, %v6527_v46 }
 0x163   : > { %v4882_v49 = vpop.f32.mrf.mxu0  ;;  %v6591_v19 = vpop.f32.mrf.mxu1 }
 0x164   : > { %v1992_v6 = vadd.f32 %v1991_v4, %v1826_v50 }
 0x165   : > { %v2005_v25 = vpop.f32.mrf.mxu0  ;;  %v6593_v29 = vpop.f32.mrf.mxu1 }
 0x167   : > { %v4885_v9 = vpop.f32.mrf.mxu0  ;;  %v6595_v1 = vpop.f32.mrf.mxu1 }
 0x168   : > { %v2027_v41 = vadd.f32 %v4885_v9, %v1856_v3 }
 0x169   : > { %v2019_v52 = vpop.f32.mrf.mxu0  ;;  %v6597_v35 = vpop.f32.mrf.mxu1 }
 0x16b   : > { %v4888_v2 = vpop.f32.mrf.mxu0  ;;  %v6599_v54 = vpop.f32.mrf.mxu1 }
 0x16d   : > { %v2033_v55 = vpop.f32.mrf.mxu0  ;;  %v6601_v5 = vpop.f32.mrf.mxu1 }
 0x16f   : > { %v4891_v11 = vpop.f32.mrf.mxu0  ;;  %v6603_v32 = vpop.f32.mrf.mxu1 }
 0x170   : > { %7619 = vst [vmem:[#allocation52_spill] sm:$0xff] %v6603_v32 }
 0x171   : > { %v2047_v59 = vpop.f32.mrf.mxu0  ;;  %v6605_v47 = vpop.f32.mrf.mxu1 }
 0x172   : > { %7620 = vst [vmem:[#allocation53_spill] sm:$0xff] %v6605_v47  ;;  %v1832_v47 = vadd.f32 %v6537_v22, %v1605_v8  ;;  %v1844_v8 = vadd.f32 %v6547_v7, %v1625_v40  ;;  %v1874_v7 = vadd.f32 %v6567_v18, %v1675_v16 }
 0x173   : > { %v4894_v57 = vpop.f32.mrf.mxu0  ;;  %v6607_v36 = vpop.f32.mrf.mxu1 }
 0x174   : > { %7621 = vst [vmem:[#allocation54_spill] sm:$0xff] %v6607_v36  ;;  %v1615_v36 = vadd.f32 %v6557_v23, %v6505_v0  ;;  %v1695_v0 = vadd.f32 %v1694_v31, %v6534_v42  ;;  %v2013_v33 = vadd.f32 %v4882_v49, %v1844_v8  ;;  %v7627_v8 = vld [vmem:[#allocation50_spill] sm:$0xff] }
 0x175   : > { %v2061_v14 = vpop.f32.mrf.mxu0  ;;  %v6611_v58 = vpop.f32.mrf.mxu1 }
 0x176   : > { %7622 = vst [vmem:[#allocation55_spill] sm:$0xff] %v6611_v58  ;;  %v1655_v58 = vadd.f32 %v1654_v10, %v6520_v26  ;;  %v1838_v44 = vadd.f32 %v6551_v53, %v1615_v36  ;;  %v1715_v26 = vadd.f32 %v1714_v61, %v6540_v39  ;;  %v1886_v31 = vadd.f32 %v6571_v63, %v1695_v0  ;;  %v7628_v0 = vld [vmem:[#allocation51_spill] sm:$0xff] }
 0x177   : > { %v4897_v51 = vpop.f32.mrf.mxu0  ;;  %v6617_v32 = vpop.f32.mrf.mxu1  ;;  %v2020_v36 = vadd.f32 %v2019_v52, %v1850_v38  ;;  %v2041_v53 = vadd.f32 %v4888_v2, %v6569_v27  ;;  %v2196_v18 = vadd.f32 %v6585_v15, %v2013_v33  ;;  %v6649_v27 = vld [vmem:[%s7439_s4] ss:$0 sm:$0xff]  ;;  %v7624_v2 = vld [vmem:[#allocation52_spill] sm:$0xff] }
 0x178   : > { %7623 = vst [vmem:[#allocation56_spill] sm:$0xff] %v6617_v32  ;;  %v1999_v32 = vadd.f32 %v4879_v21, %v1832_v47  ;;  %v1862_v45 = vadd.f32 %v6565_v62, %v1655_v58  ;;  %v2006_v42 = vadd.f32 %v2005_v25, %v1838_v44  ;;  %v1898_v24 = vadd.f32 %v6575_v60, %v1715_v26 }
 0x179   : > { %v2075_v56 = vpop.f32.mrf.mxu0  ;;  %v6627_v17 = vpop.f32.mrf.mxu1  ;;  %v2172_v58 = vadd.f32 %v6581_v28, %v1992_v6  ;;  %v2055_v62 = vadd.f32 %v4891_v11, %v6573_v13  ;;  %v2062_v40 = vadd.f32 %v2061_v14, %v1886_v31  ;;  %v2212_v28 = vadd.f32 %v6591_v19, %v2027_v41 }
 0x17a   : > { %v2180_v10 = vadd.f32 %v4907_v20, %v1999_v32  ;;  %v2034_v48 = vadd.f32 %v2033_v55, %v1862_v45  ;;  %v2048_v32 = vadd.f32 %v2047_v59, %v1874_v7  ;;  %v2069_v20 = vadd.f32 %v4894_v57, %v6577_v34 }
 0x17b   : > { %v4900_v22 = vpop.f32.mrf.mxu0  ;;  %v4963_v23 = vpop.f32.mrf.mxu1  ;;  %v2188_v60 = vadd.f32 %v6589_v37, %v2006_v42  ;;  %v2204_v13 = vadd.f32 %v6593_v29, %v2020_v36  ;;  %v2228_v59 = vadd.f32 %v6595_v1, %v2041_v53  ;;  %v2083_v14 = vadd.f32 %v4897_v51, %v6579_v12  ;;  %v7625_v1 = vld [vmem:[#allocation53_spill] sm:$0xff]  ;;  %v7626_v50 = vld [vmem:[#allocation54_spill] sm:$0xff] }
 0x17c   : > { %v2220_v57 = vadd.f32 %v6597_v35, %v2034_v48  ;;  %v6658_v25 = vadd.f32 %v6599_v54, %v2055_v62  ;;  %v6662_v19 = vadd.f32 %v6601_v5, %v2048_v32  ;;  %v6665_v29 = vadd.f32 %v7624_v2, %v2069_v20 }
 0x17d   : > { %v2089_v46 = vpop.f32.mrf.mxu0  ;;  %v2531_v47 = vpop.f32.mrf.mxu1  ;;  %v6668_v55 = vadd.f32 %v7625_v1, %v2062_v40  ;;  %v2076_v35 = vadd.f32 %v2075_v56, %v1898_v24  ;;  %v6672_v16 = vadd.f32 %v7626_v50, %v2083_v14  ;;  %v2097_v5 = vadd.f32 %v4900_v22, %v7627_v8  ;;  %v7629_v45 = vld [vmem:[#allocation55_spill] sm:$0xff]  ;;  %v7632_v1 = vld [vmem:[#allocation4_spill] sm:$0xff] }
 0x17e   : > { %v7633_v8 = vld [vmem:[#allocation7_spill] sm:$0xff] }
 0x17f   : > { %v4935_v39 = vpop.f32.mrf.mxu0  ;;  %v4966_v61 = vpop.f32.mrf.mxu1  ;;  %v6678_v33 = vadd.f32 %v7629_v45, %v2076_v35 }
 0x180   : > { %v2375_v21 = vadd.f32 %v4935_v39, %v2180_v10 }
 0x181   : > { %v2368_v63 = vpop.f32.mrf.mxu0  ;;  %v2543_v4 = vpop.f32.mrf.mxu1 }
 0x182   : > { %v2538_v49 = vadd.f32 %v4963_v23, %v2375_v21  ;;  %v2369_v11 = vadd.f32 %v2368_v63, %v2172_v58  ;;  %v2090_v23 = vadd.f32 %v2089_v46, %v7628_v0  ;;  %v7630_v58 = vld [vmem:[#allocation56_spill] sm:$0xff] }
 0x183   : > { %v4938_v34 = vpop.f32.mrf.mxu0  ;;  %v4969_v15 = vpop.f32.mrf.mxu1  ;;  %v6689_v62 = vadd.f32 %v7630_v58, %v2097_v5 }
 0x184   : > { %v2633_v9 = vadd.f32 %v6649_v27, %v2538_v49  ;;  %v2532_v37 = vadd.f32 %v2531_v47, %v2369_v11  ;;  %v2387_v52 = vadd.f32 %v4938_v34, %v2196_v18  ;;  %v6692_v21 = vadd.f32 %v6627_v17, %v2090_v23  ;;  %v7631_v34 = vld [vmem:[#allocation2_spill] sm:$0xff] }
 0x185   : > { %v2380_v12 = vpop.f32.mrf.mxu0  ;;  %v2555_v51 = vpop.f32.mrf.mxu1 }
 0x186   : > { %vm2649_vm2 = vcmp.ge.f32.partialorder %v2633_v9, 0.0  ;;  %v2665_v43 = vmul.f32 0.01, %v2633_v9  ;;  %v2632_v54 = vadd.f32 %v6649_v27, %v2532_v37  ;;  %v2550_v30 = vadd.f32 %v4966_v61, %v2387_v52 }
 0x187   : > { %v2381_v44 = vadd.f32 %v2380_v12, %v2188_v60  ;;  %v4941_v3 = vpop.f32.mrf.mxu0  ;;  %v4972_v26 = vpop.f32.mrf.mxu1 }
 0x188   : > { %v2681_v6 = vsel %vm2649_vm2, %v2633_v9, %v2665_v43  ;;  %vm2648_vm3 = vcmp.ge.f32.partialorder %v2632_v54, 0.0  ;;  %v2664_v56 = vmul.f32 0.01, %v2632_v54  ;;  %v2635_v38 = vadd.f32 %v6649_v27, %v2550_v30 }
 0x189   : > { %v6680_v47 = vand.u32 4294901760, %v2681_v6  ;;  %v2544_v7 = vadd.f32 %v2543_v4, %v2381_v44  ;;  %v2399_v10 = vadd.f32 %v4941_v3, %v2212_v28  ;;  %v2392_v42 = vpop.f32.mrf.mxu0  ;;  %v2567_v41 = vpop.f32.mrf.mxu1  ;;  %vm4142_vm2 = vcmask 64512  }
 0x18a   : > { %v2680_v22 = vsel %vm2648_vm3, %v2632_v54, %v2664_v56  ;;  %vm2651_vm4 = vcmp.ge.f32.partialorder %v2635_v38, 0.0  ;;  %v2667_v46 = vmul.f32 0.01, %v2635_v38  ;;  %v2393_v31 = vadd.f32 %v2392_v42, %v2204_v13 }
 0x18b   : > { %v6683_v36 = vsub.f32 %v2681_v6, %v6680_v47  ;;  %v2634_v53 = vadd.f32 %v6649_v27, %v2544_v7  ;;  %v2562_v48 = vadd.f32 %v4969_v15, %v2399_v10  ;;  %v4944_v39 = vpop.f32.mrf.mxu0  ;;  %v6686_v61 = vand.u32 4294901760, %v2680_v22  ;;  %v4975_v24 = vpop.f32.mrf.mxu1 }
 0x18c   : > { %v2556_v18 = vadd.f32 %v2555_v51, %v2393_v31  ;;  %v2411_v32 = vadd.f32 %v4944_v39, %v2228_v59  ;;  %v6694_v20 = vsel %vm2651_vm4, %v2635_v38, %v2667_v46 }
 0x18d   : > { %vm2650_vm5 = vcmp.ge.f32.partialorder %v2634_v53, 0.0  ;;  %v2666_v40 = vmul.f32 0.01, %v2634_v53  ;;  %v2637_v63 = vadd.f32 %v6649_v27, %v2562_v48  ;;  %v2404_v4 = vpop.f32.mrf.mxu0  ;;  %5073 = vmatprep.mubr.f32.mxu1 %v6686_v61  ;;  %v2579_v60 = vpop.f32.mrf.mxu1  ;;  %v2805_v28 = vand.u32 4294901760, %v6683_v36 }
 0x18e   : > { %v2636_v49 = vadd.f32 %v6649_v27, %v2556_v18  ;;  %v2574_v11 = vadd.f32 %v4972_v26, %v2411_v32  ;;  %v2405_v13 = vadd.f32 %v2404_v4, %v2220_v57  ;;  %5074 = vmatmul.mubr.f32.vlgmr.msra.gmra.mxu1 %v6680_v47  ;;  %v6705_v9 = vsub.f32 %v2680_v22, %v6686_v61 }
 0x18f   : > { %v6701_v17 = vsel %vm2650_vm5, %v2634_v53, %v2666_v40  ;;  %vm2653_vm6 = vcmp.ge.f32.partialorder %v2637_v63, 0.0  ;;  %v2669_v59 = vmul.f32 0.01, %v2637_v63  ;;  %v4947_v14 = vpop.f32.mrf.mxu0  ;;  %5154 = vmatpush3.msra.mxu1 %v7631_v34  ;;  %v4978_v15 = vpop.f32.mrf.mxu1  ;;  %v6715_v51 = vand.u32 4294901760, %v6694_v20  ;;  %v7635_v53 = vld [vmem:[#allocation13_spill] sm:$0xff]  ;;  %v7636_v40 = vld [vmem:[#allocation14_spill] sm:$0xff] }
 0x190   : > { %vm2652_vm7 = vcmp.ge.f32.partialorder %v2636_v49, 0.0  ;;  %v2668_v37 = vmul.f32 0.01, %v2636_v49  ;;  %v2639_v52 = vadd.f32 %v6649_v27, %v2574_v11  ;;  %v2568_v2 = vadd.f32 %v2567_v41, %v2405_v13  ;;  %5155 = vmatprep.subr.mxu1 %v7632_v1 }
 0x191   : > { %v2423_v57 = vadd.f32 %v4947_v14, %v6658_v25  ;;  %v2416_v35 = vpop.f32.mrf.mxu0  ;;  %v6711_v12 = vand.u32 4294901760, %v6701_v17  ;;  %5156 = vmatpush3.msra.mxu1 %v7632_v1  ;;  %v2591_v43 = vpop.f32.mrf.mxu1  ;;  %v2795_v54 = vand.u32 4294901760, %v6705_v9  ;;  %v6719_v30 = vsel %vm2653_vm6, %v2637_v63, %v2669_v59 }
 0x192   : > { %v6721_v50 = vsel %vm2652_vm7, %v2636_v49, %v2668_v37  ;;  %vm2655_vm8 = vcmp.ge.f32.partialorder %v2639_v52, 0.0  ;;  %v2638_v25 = vadd.f32 %v6649_v27, %v2568_v2  ;;  %5157 = vmatprep.subr.mxu1 %v7633_v8  ;;  %v2417_v0 = vadd.f32 %v2416_v35, %v6662_v19  ;;  %v7634_v19 = vld [vmem:[#allocation10_spill] sm:$0xff] }
 0x193   : > { %v2586_v5 = vadd.f32 %v4975_v24, %v2423_v57  ;;  %5076 = vmatprep.mubr.f32.mxu1 %v6711_v12  ;;  %v4950_v23 = vpop.f32.mrf.mxu0  ;;  %5158 = vmatpush3.msra.mxu1 %v7633_v8  ;;  %v2796_v44 = vsub.f32 %v6705_v9, %v2795_v54  ;;  %v6732_v3 = vand.u32 4294901760, %v6721_v50  ;;  %v2671_v26 = vmul.f32 0.01, %v2639_v52  ;;  %v4981_v38 = vpop.f32.mrf.mxu1  ;;  %v7639_v35 = vld [vmem:[#allocation18_spill] sm:$0xff] }
 0x194   : > { %vm2654_vm9 = vcmp.ge.f32.partialorder %v2638_v25, 0.0  ;;  %v2670_v6 = vmul.f32 0.01, %v2638_v25  ;;  %5077 = vmatmul.mubr.f32.gmra.mxu1 %v6715_v51  ;;  %v2435_v56 = vadd.f32 %v4950_v23, %v6665_v29  ;;  %5159 = vmatprep.subr.mxu1 %v7634_v19  ;;  %v2580_v7 = vadd.f32 %v2579_v60, %v2417_v0 }
 0x195   : > { %v2641_v45 = vadd.f32 %v6649_v27, %v2586_v5  ;;  %v2428_v10 = vpop.f32.mrf.mxu0  ;;  %v2797_v42 = vand.u32 4294901760, %v2796_v44  ;;  %5079 = vmatprep.mubr.f32.mxu1 %v6732_v3  ;;  %5160 = vmatpush3.msra.mxu1 %v7634_v19  ;;  %v2806_v41 = vsub.f32 %v6683_v36, %v2805_v28  ;;  %v6747_v31 = vand.u32 4294901760, %v6719_v30  ;;  %v2603_v63 = vpop.f32.mrf.mxu1  ;;  %v7640_v44 = vld [vmem:[#allocation9_spill] sm:$0xff] }
 0x196   : > { %v6743_v22 = vsel %vm2654_vm9, %v2638_v25, %v2670_v6  ;;  %v2598_v46 = vadd.f32 %v4978_v15, %v2435_v56  ;;  %v2429_v29 = vadd.f32 %v2428_v10, %v6668_v55  ;;  %5161 = vmatprep.subr.mxu1 %v7635_v53  ;;  %v2640_v39 = vadd.f32 %v6649_v27, %v2580_v7  ;;  %v7637_v15 = vld [vmem:[#allocation3_spill] sm:$0xff]  ;;  %v7641_v56 = vld [vmem:[#allocation22_spill] sm:$0xff] }
 0x197   : > { %vm2657_vm10 = vcmp.ge.f32.partialorder %v2641_v45, 0.0  ;;  %v2673_v48 = vmul.f32 0.01, %v2641_v45  ;;  %5017 = vmatprep.mubr.f32.mxu0 %v2797_v42  ;;  %v2807_v24 = vand.u32 4294901760, %v2806_v41  ;;  %v4953_v58 = vpop.f32.mrf.mxu0  ;;  %5162 = vmatpush3.msra.mxu1 %v7635_v53  ;;  %v6757_v4 = vand.u32 4294901760, %v6743_v22  ;;  %v4984_v23 = vpop.f32.mrf.mxu1 }
 0x198   : > { %v2643_v18 = vadd.f32 %v6649_v27, %v2598_v46  ;;  %v2592_v32 = vadd.f32 %v2591_v43, %v2429_v29  ;;  %5080 = vmatmul.mubr.f32.gmra.mxu1 %v6747_v31  ;;  %v2447_v55 = vadd.f32 %v4953_v58, %v6672_v16  ;;  %5163 = vmatprep.subr.mxu1 %v7636_v40  ;;  %vm2656_vm11 = vcmp.ge.f32.partialorder %v2640_v39, 0.0 }
 0x199   : > { %v6760_v60 = vsel %vm2655_vm8, %v2639_v52, %v2671_v26  ;;  %v2672_v49 = vmul.f32 0.01, %v2640_v39  ;;  %5018 = vmatmul.mubr.f32.vlgmr.msra.gmra.mxu0 %v2807_v24  ;;  %v2440_v11 = vpop.f32.mrf.mxu0  ;;  %v6764_v13 = vsub.f32 %v6701_v17, %v6711_v12  ;;  %5164 = vmatpush3.msra.mxu1 %v7636_v40  ;;  %v6768_v16 = vsel %vm2657_vm10, %v2641_v45, %v2673_v48  ;;  %v7638_v52 = vld [vmem:[#allocation6_spill] sm:$0xff]  ;;  %v7642_v48 = vld [vmem:[#allocation12_spill] sm:$0xff] }
 0x19a   : > { %v2675_v59 = vmul.f32 0.01, %v2643_v18  ;;  %v2642_v14 = vadd.f32 %v6649_v27, %v2592_v32  ;;  %5098 = vmatpush3.msra.mxu0 %v7637_v15  ;;  %v2610_v37 = vadd.f32 %v4981_v38, %v2447_v55  ;;  %5082 = vmatprep.mubr.f32.mxu1 %v6757_v4  ;;  %vm2659_vm12 = vcmp.ge.f32.partialorder %v2643_v18, 0.0  ;;  %v7643_v32 = vld [vmem:[#allocation25_spill] sm:$0xff] }
 0x19b   : > { %5099 = vmatprep.subr.mxu0 %v7638_v52  ;;  %v2441_v2 = vadd.f32 %v2440_v11, %v6678_v33  ;;  %v2815_v17 = vand.u32 4294901760, %v6764_v13  ;;  %v6778_v57 = vsub.f32 %v6694_v20, %v6715_v51  ;;  %5165 = vmatprep.subr.mxu1 %v7639_v35  ;;  %v4956_v43 = vpop.f32.mrf.mxu0  ;;  %v6782_v25 = vsel %vm2656_vm11, %v2640_v39, %v2672_v49 }
 0x19c   : > { %vm2658_vm13 = vcmp.ge.f32.partialorder %v2642_v14, 0.0  ;;  %v2674_v5 = vmul.f32 0.01, %v2642_v14  ;;  %v2645_v0 = vadd.f32 %v6649_v27, %v2610_v37  ;;  %5100 = vmatpush3.msra.mxu0 %v7638_v52  ;;  %5166 = vmatpush3.msra.mxu1 %v7639_v35  ;;  %v6793_v6 = vand.u32 4294901760, %v6760_v60  ;;  %v7645_v52 = vld [vmem:[#allocation17_spill] sm:$0xff] }
 0x19d   : > { %v2604_v33 = vadd.f32 %v2603_v63, %v2441_v2  ;;  %v2816_v20 = vsub.f32 %v6764_v13, %v2815_v17  ;;  %5101 = vmatprep.subr.mxu0 %v7640_v44  ;;  %v2825_v26 = vand.u32 4294901760, %v6778_v57  ;;  %5167 = vmatprep.subr.mxu1 %v7641_v56  ;;  %v2452_v38 = vpop.f32.mrf.mxu0  ;;  %v6797_v45 = vsel %vm2659_vm12, %v2643_v18, %v2675_v59 }
 0x19e   : > { %v6799_v7 = vsel %vm2658_vm13, %v2642_v14, %v2674_v5  ;;  %v2677_v10 = vmul.f32 0.01, %v2645_v0  ;;  %5102 = vmatpush3.msra.mxu0 %v7640_v44  ;;  %v2459_v42 = vadd.f32 %v4956_v43, %v6689_v62  ;;  %5168 = vmatpush3.msra.mxu1 %v7641_v56  ;;  %v2453_v39 = vadd.f32 %v2452_v38, %v6692_v21  ;;  %v2615_v62 = vpop.f32.mrf.mxu1  ;;  %v7644_v21 = vld [vmem:[#allocation16_spill] sm:$0xff] }
 0x19f   : > { %v2644_v41 = vadd.f32 %v6649_v27, %v2604_v33  ;;  %v2817_v46 = vand.u32 4294901760, %v2816_v20  ;;  %v2826_v29 = vsub.f32 %v6778_v57, %v2825_v26  ;;  %5083 = vmatmul.mubr.f32.gmra.mxu1 %v6793_v6  ;;  %5103 = vmatprep.subr.mxu0 %v7642_v48  ;;  %vm2661_vm14 = vcmp.ge.f32.partialorder %v2645_v0, 0.0  ;;  %v7646_v38 = vld [vmem:[#allocation28_spill] sm:$0xff] }
 0x1a0   : > { %v2622_v24 = vadd.f32 %v4984_v23, %v2459_v42  ;;  %5104 = vmatpush3.msra.mxu0 %v7642_v48  ;;  %v6814_v58 = vsub.f32 %v6721_v50, %v6732_v3  ;;  %v6817_v18 = vand.u32 4294901760, %v6782_v25  ;;  %5169 = vmatprep.subr.mxu1 %v7643_v32  ;;  %v2616_v49 = vadd.f32 %v2615_v62, %v2453_v39 }
 0x1a1   : > { %vm2660_vm15 = vcmp.ge.f32.partialorder %v2644_v41, 0.0  ;;  %v2676_v55 = vmul.f32 0.01, %v2644_v41  ;;  %5020 = vmatprep.mubr.f32.mxu0 %v2817_v46  ;;  %v2827_v63 = vand.u32 4294901760, %v2826_v29  ;;  %5105 = vmatprep.subr.mxu0 %v7644_v21  ;;  %v6826_v50 = vsub.f32 %v6719_v30, %v6747_v31 }
 0x1a2   : > { %v2647_v11 = vadd.f32 %v6649_v27, %v2622_v24  ;;  %v2835_v59 = vand.u32 4294901760, %v6814_v58  ;;  %5085 = vmatprep.mubr.f32.mxu1 %v6817_v18  ;;  %v6829_v14 = vand.u32 4294901760, %v6768_v16  ;;  %5106 = vmatpush3.msra.mxu0 %v7644_v21  ;;  %v6833_v15 = vsel %vm2661_vm14, %v2645_v0, %v2677_v10  ;;  %v7647_v10 = vld [vmem:[#allocation21_spill] sm:$0xff] }
 0x1a3   : > { %5021 = vmatmul.mubr.f32.gmra.mxu0 %v2827_v63  ;;  %v2646_v37 = vadd.f32 %v6649_v27, %v2616_v49  ;;  %5107 = vmatprep.subr.mxu0 %v7645_v52  ;;  %v6839_v2 = vsub.f32 %v6743_v22, %v6757_v4  ;;  %v6842_v30 = vand.u32 4294901760, %v6799_v7  ;;  %v2692_v43 = vsel %vm2660_vm15, %v2644_v41, %v2676_v55  ;;  %v7649_v49 = vld [vmem:[#allocation24_spill] sm:$0xff] }
 0x1a4   : > { %vm2663_vm0 = vcmp.ge.f32.partialorder %v2647_v11, 0.0  ;;  %v2836_v5 = vsub.f32 %v6814_v58, %v2835_v59  ;;  %v2845_v0 = vand.u32 4294901760, %v6826_v50  ;;  %5086 = vmatmul.mubr.f32.gmra.mxu1 %v6829_v14  ;;  %5108 = vmatpush3.msra.mxu0 %v7645_v52  ;;  %v6856_v23 = vsub.f32 %v6760_v60, %v6793_v6 }
 0x1a5   : > { %vm2662_vm1 = vcmp.ge.f32.partialorder %v2646_v37, 0.0  ;;  %v2678_v27 = vmul.f32 0.01, %v2646_v37  ;;  %5170 = vmatpush3.msra.mxu1 %v7643_v32  ;;  %v2855_v22 = vand.u32 4294901760, %v6839_v2  ;;  %5088 = vmatprep.mubr.f32.mxu1 %v6842_v30  ;;  %v2679_v33 = vmul.f32 0.01, %v2647_v11 }
 0x1a6   : > { %v2837_v20 = vand.u32 4294901760, %v2836_v5  ;;  %v2846_v44 = vsub.f32 %v6826_v50, %v2845_v0  ;;  %5171 = vmatprep.subr.mxu1 %v7646_v38  ;;  %5109 = vmatprep.subr.mxu0 %v7647_v10  ;;  %v6864_v42 = vand.u32 4294901760, %v6797_v45  ;;  %v7552_v60 = vand.u32 4294901760, %v6856_v23 }
 0x1a7   : > { %v2694_v41 = vsel %vm2662_vm1, %v2646_v37, %v2678_v27  ;;  %v2856_v46 = vsub.f32 %v6839_v2, %v2855_v22  ;;  %5172 = vmatpush3.msra.mxu1 %v7646_v38  ;;  %5110 = vmatpush3.msra.mxu0 %v7647_v10  ;;  %v6874_v29 = vsub.f32 %v6782_v25, %v6817_v18  ;;  %v6877_v39 = vand.u32 4294901760, %v2692_v43  ;;  %v7648_v25 = vld [vmem:[#allocation29_spill] sm:$0xff] }
 0x1a8   : > { %5023 = vmatprep.mubr.f32.mxu0 %v2837_v20  ;;  %v2847_v48 = vand.u32 4294901760, %v2846_v44  ;;  %5089 = vmatmul.mubr.f32.gmra.mxu1 %v6864_v42  ;;  %v6881_v24 = vsub.f32 %v6768_v16, %v6829_v14  ;;  %v6884_v62 = vand.u32 4294901760, %v6833_v15  ;;  %v2866_v63 = vsub.f32 %v6856_v23, %v7552_v60  ;;  %v7653_v60 = vld [vmem:[#allocation31_spill] sm:$0xff] }
 0x1a9   : > { %v2857_v55 = vand.u32 4294901760, %v2856_v46  ;;  %5173 = vmatprep.subr.mxu1 %v7648_v25  ;;  %5111 = vmatprep.subr.mxu0 %v7649_v49  ;;  %v7550_v21 = vand.u32 4294901760, %v6874_v29  ;;  %v6894_v37 = vsub.f32 %v6799_v7, %v6842_v30  ;;  %v6900_v52 = vsub.f32 %v6797_v45, %v6864_v42  ;;  %v7650_v46 = vld [vmem:[#allocation33_spill] sm:$0xff] }
 0x1aa   : > { %5024 = vmatmul.mubr.f32.gmra.mxu0 %v2847_v48  ;;  %5174 = vmatpush3.msra.mxu1 %v7648_v25  ;;  %v7549_v16 = vand.u32 4294901760, %v6881_v24  ;;  %v6907_v7 = vand.u32 4294901760, %v2694_v41  ;;  %v6910_v20 = vsub.f32 %v2692_v43, %v6877_v39  ;;  %v2695_v44 = vsel %vm2663_vm0, %v2647_v11, %v2679_v33 }
 0x1ab   : > { %5026 = vmatprep.mubr.f32.mxu0 %v2857_v55  ;;  %5112 = vmatpush3.msra.mxu0 %v7649_v49  ;;  %v2876_v5 = vsub.f32 %v6874_v29, %v7550_v21  ;;  %v7551_v27 = vand.u32 4294901760, %v6894_v37  ;;  %v2867_v10 = vand.u32 4294901760, %v2866_v63  ;;  %v7554_v48 = vand.u32 4294901760, %v6900_v52  ;;  %v7651_v49 = vld [vmem:[#allocation27_spill] sm:$0xff] }
 0x1ac   : > { %5175 = vmatprep.subr.mxu1 %v7650_v46  ;;  %5091 = vmatprep.mubr.f32.mxu1 %v6877_v39  ;;  %v2886_v45 = vsub.f32 %v6881_v24, %v7549_v16  ;;  %v7553_v43 = vand.u32 4294901760, %v6910_v20  ;;  %v6927_v33 = vsub.f32 %v6833_v15, %v6884_v62  ;;  %v6934_v16 = vsub.f32 %v2694_v41, %v6907_v7 }
 0x1ad   : > { %v2877_v55 = vand.u32 4294901760, %v2876_v5  ;;  %5113 = vmatprep.subr.mxu0 %v7651_v49  ;;  %5176 = vmatpush3.msra.mxu1 %v7650_v46  ;;  %v2896_v11 = vsub.f32 %v6894_v37, %v7551_v27  ;;  %v6931_v5 = vand.u32 4294901760, %v2695_v44  ;;  %v7652_v27 = vld [vmem:[#allocation37_spill] sm:$0xff]  ;;  %v2906_v15 = vsub.f32 %v6900_v52, %v7554_v48  ;;  %v7657_v48 = vld [vmem:[#allocation36_spill] sm:$0xff] }
 0x1ae   : > { %5027 = vmatmul.mubr.f32.gmra.mxu0 %v2867_v10  ;;  %5092 = vmatmul.mubr.f32.gmra.mxu1 %v6884_v62  ;;  %v2887_v21 = vand.u32 4294901760, %v2886_v45  ;;  %v2916_v10 = vsub.f32 %v6910_v20, %v7553_v43  ;;  %v7556_v41 = vand.u32 4294901760, %v6927_v33  ;;  %v7654_v45 = vld [vmem:[#allocation40_spill] sm:$0xff]  ;;  %v7656_v43 = vld [vmem:[#allocation43_spill] sm:$0xff] }
 0x1af   : > { %5029 = vmatprep.mubr.f32.mxu0 %v2877_v55  ;;  %5114 = vmatpush3.msra.mxu0 %v7651_v49  ;;  %v2897_v63 = vand.u32 4294901760, %v2896_v11  ;;  %v7555_v55 = vand.u32 4294901760, %v6934_v16  ;;  %v6951_v49 = vsub.f32 %v2695_v44, %v6931_v5  ;;  %v7655_v11 = vld [vmem:[#allocation32_spill] sm:$0xff] }
 0x1b0   : > { %5177 = vmatprep.subr.mxu1 %v7652_v27  ;;  %5115 = vmatprep.subr.mxu0 %v7653_v60 }
 0x1b1   : > { %5178 = vmatpush3.msra.mxu1 %v7652_v27  ;;  %5116 = vmatpush3.msra.mxu0 %v7653_v60  ;;  %v2907_v60 = vand.u32 4294901760, %v2906_v15  ;;  %v2936_v44 = vsub.f32 %v6934_v16, %v7555_v55  ;;  %v2945_v15 = vand.u32 4294901760, %v6951_v49 }
 0x1b2   : > { %5030 = vmatmul.mubr.f32.gmra.mxu0 %v2887_v21  ;;  %5179 = vmatprep.subr.mxu1 %v7654_v45  ;;  %v2917_v21 = vand.u32 4294901760, %v2916_v10  ;;  %v7658_v10 = vld [vmem:[#allocation46_spill] sm:$0xff] }
 0x1b3   : > { %5032 = vmatprep.mubr.f32.mxu0 %v2897_v63  ;;  %5094 = vmatprep.mubr.f32.mxu1 %v6907_v7  ;;  %v2926_v63 = vsub.f32 %v6927_v33, %v7556_v41  ;;  %v2937_v55 = vand.u32 4294901760, %v2936_v44  ;;  %v2946_v41 = vsub.f32 %v6951_v49, %v2945_v15 }
 0x1b4   : > { %5117 = vmatprep.subr.mxu0 %v7655_v11  ;;  %5180 = vmatpush3.msra.mxu1 %v7654_v45 }
 0x1b5   : > { %5095 = vmatmul.mubr.f32.gmra.mxu1 %v6931_v5  ;;  %5118 = vmatpush3.msra.mxu0 %v7655_v11  ;;  %v2927_v11 = vand.u32 4294901760, %v2926_v63 }
 0x1b6   : > { %5033 = vmatmul.mubr.f32.gmra.mxu0 %v2907_v60  ;;  %5181 = vmatprep.subr.mxu1 %v7656_v43  ;;  %v7659_v60 = vld [vmem:[#allocation39_spill] sm:$0xff] }
 0x1b7   : > { %5119 = vmatprep.subr.mxu0 %v7657_v48  ;;  %5182 = vmatpush3.msra.mxu1 %v7656_v43 }
 0x1b8   : > { %5185 = vmatprep.mubr.f32.mxu1 %v2795_v54  ;;  %5120 = vmatpush3.msra.mxu0 %v7657_v48  ;;  %v7660_v54 = vld [vmem:[#allocation42_spill] sm:$0xff]  ;;  %v7661_v48 = vld [vmem:[#allocation45_spill] sm:$0xff] }
 0x1b9   : > { %5183 = vmatprep.subr.mxu1 %v7658_v10  ;;  %5035 = vmatprep.mubr.f32.mxu0 %v2917_v21 }
 0x1ba   : > { %5121 = vmatprep.subr.mxu0 %v7659_v60  ;;  %5184 = vmatpush3.msra.mxu1 %v7658_v10 }
 0x1bb   : > { %5036 = vmatmul.mubr.f32.gmra.mxu0 %v2927_v11  ;;  %5186 = vmatmul.mubr.f32.vlgmr.msra.gmra.mxu1 %v2805_v28  ;;  %v2947_v28 = vand.u32 4294901760, %v2946_v41 }
 0x1bc   : > { %5122 = vmatpush3.msra.mxu0 %v7659_v60  ;;  %5265 = vmatprep.subr.mxu1 %v7631_v34 }
 0x1bd   : > { %5123 = vmatprep.subr.mxu0 %v7660_v54  ;;  %5188 = vmatprep.mubr.f32.mxu1 %v2815_v17  ;;  %v7662_v17 = vld [vmem:[#allocation48_spill] sm:$0xff] }
 0x1be   : > { %5266 = vmatpush3.msra.mxu1 %v7631_v34  ;;  %5124 = vmatpush3.msra.mxu0 %v7660_v54  ;;  %v7663_v34 = vld [vmem:[#allocation5_spill] sm:$0xff] }
 0x1bf   : > { %5267 = vmatprep.subr.mxu1 %v7632_v1  ;;  %5038 = vmatprep.mubr.f32.mxu0 %v2937_v55 }
 0x1c0   : > { %5125 = vmatprep.subr.mxu0 %v7661_v48  ;;  %5268 = vmatpush3.msra.mxu1 %v7632_v1  ;;  %v7666_v1 = vand.u32 4294901760, %v6856_v23 }
 0x1c1   : > { %5039 = vmatmul.mubr.f32.gmra.mxu0 %v2947_v28  ;;  %5189 = vmatmul.mubr.f32.gmra.mxu1 %v2825_v26  ;;  %v7674_v26 = vand.u32 4294901760, %v6900_v52 }
 0x1c2   : > { %5126 = vmatpush3.msra.mxu0 %v7661_v48  ;;  %5269 = vmatprep.subr.mxu1 %v7633_v8 }
 0x1c3   : > { %5127 = vmatprep.subr.mxu0 %v7662_v17  ;;  %5129 = vmatprep.mubr.f32.mxu0 %v6705_v9  ;;  %v7664_v9 = vld [vmem:[#allocation8_spill] sm:$0xff] }
 0x1c4   : > { %5191 = vmatprep.mubr.f32.mxu1 %v2835_v59  ;;  %5270 = vmatpush3.msra.mxu1 %v7633_v8  ;;  %v7667_v8 = vand.u32 4294901760, %v6874_v29  ;;  %v7678_v59 = vand.u32 4294901760, %v6927_v33 }
 0x1c5   : > { %5128 = vmatpush3.msra.mxu0 %v7662_v17  ;;  %5271 = vmatprep.subr.mxu1 %v7634_v19 }
 0x1c6   : > { %5209 = vmatprep.subr.mxu0 %v7663_v34  ;;  %5272 = vmatpush3.msra.mxu1 %v7634_v19  ;;  %v7668_v19 = vld [vmem:[#allocation15_spill] sm:$0xff] }
 0x1c7   : > { %5130 = vmatmul.mubr.f32.vlgmr.msra.gmra.mxu0 %v6683_v36  ;;  %5192 = vmatmul.mubr.f32.gmra.mxu1 %v2845_v0  ;;  %v7665_v36 = vld [vmem:[#allocation11_spill] sm:$0xff] }
 0x1c8   : > { %5210 = vmatpush3.msra.mxu0 %v7663_v34  ;;  %5273 = vmatprep.subr.mxu1 %v7635_v53  ;;  %v7681_v0 = vld [vmem:[#allocation35_spill] sm:$0xff] }
 0x1c9   : > { %5132 = vmatprep.mubr.f32.mxu0 %v6764_v13  ;;  %5194 = vmatprep.mubr.f32.mxu1 %v2855_v22  ;;  %v7671_v13 = vand.u32 4294901760, %v6894_v37  ;;  %v7682_v22 = vld [vmem:[#allocation38_spill] sm:$0xff] }
 0x1ca   : > { %5211 = vmatprep.subr.mxu0 %v7664_v9  ;;  %5274 = vmatpush3.msra.mxu1 %v7635_v53  ;;  %v7669_v53 = vld [vmem:[#allocation19_spill] sm:$0xff] }
 0x1cb   : > { %5212 = vmatpush3.msra.mxu0 %v7664_v9  ;;  %5275 = vmatprep.subr.mxu1 %v7636_v40 }
 0x1cc   : > { %5213 = vmatprep.subr.mxu0 %v7665_v36  ;;  %5276 = vmatpush3.msra.mxu1 %v7636_v40  ;;  %v7670_v40 = vand.u32 4294901760, %v6881_v24 }
 0x1cd   : > { %5133 = vmatmul.mubr.f32.gmra.mxu0 %v6778_v57  ;;  %5195 = vmatmul.mubr.f32.gmra.mxu1 %v7666_v1  ;;  %v7672_v57 = vld [vmem:[#allocation20_spill] sm:$0xff] }
 0x1ce   : > { %5214 = vmatpush3.msra.mxu0 %v7665_v36  ;;  %5277 = vmatprep.subr.mxu1 %v7639_v35 }
 0x1cf   : > { %5135 = vmatprep.mubr.f32.mxu0 %v6814_v58  ;;  %5197 = vmatprep.mubr.f32.mxu1 %v7667_v8  ;;  %v7676_v58 = vld [vmem:[#allocation26_spill] sm:$0xff] }
 0x1d0   : > { %5215 = vmatprep.subr.mxu0 %v7668_v19  ;;  %5278 = vmatpush3.msra.mxu1 %v7639_v35  ;;  %v7673_v35 = vld [vmem:[#allocation23_spill] sm:$0xff] }
 0x1d1   : > { %5216 = vmatpush3.msra.mxu0 %v7668_v19  ;;  %5279 = vmatprep.subr.mxu1 %v7641_v56 }
 0x1d2   : > { %5217 = vmatprep.subr.mxu0 %v7669_v53  ;;  %5280 = vmatpush3.msra.mxu1 %v7641_v56  ;;  %v7675_v56 = vand.u32 4294901760, %v6910_v20 }
 0x1d3   : > { %5136 = vmatmul.mubr.f32.gmra.mxu0 %v6826_v50  ;;  %5198 = vmatmul.mubr.f32.gmra.mxu1 %v7670_v40  ;;  %v7679_v50 = vand.u32 4294901760, %v6934_v16 }
 0x1d4   : > { %5218 = vmatpush3.msra.mxu0 %v7669_v53  ;;  %5281 = vmatprep.subr.mxu1 %v7643_v32 }
 0x1d5   : > { %5138 = vmatprep.mubr.f32.mxu0 %v6839_v2  ;;  %5200 = vmatprep.mubr.f32.mxu1 %v7671_v13  ;;  %v7680_v2 = vld [vmem:[#allocation34_spill] sm:$0xff] }
 0x1d6   : > { %5219 = vmatprep.subr.mxu0 %v7672_v57  ;;  %5282 = vmatpush3.msra.mxu1 %v7643_v32  ;;  %v7677_v32 = vld [vmem:[#allocation30_spill] sm:$0xff] }
 0x1d7   : > { %5220 = vmatpush3.msra.mxu0 %v7672_v57  ;;  %5283 = vmatprep.subr.mxu1 %v7646_v38 }
 0x1d8   : > { %5221 = vmatprep.subr.mxu0 %v7673_v35  ;;  %5284 = vmatpush3.msra.mxu1 %v7646_v38  ;;  %v7684_v38 = vld [vmem:[#allocation44_spill] sm:$0xff] }
 0x1d9   : > { %5139 = vmatmul.mubr.f32.gmra.mxu0 %v6856_v23  ;;  %5201 = vmatmul.mubr.f32.gmra.mxu1 %v7674_v26  ;;  %v7683_v23 = vld [vmem:[#allocation41_spill] sm:$0xff] }
 0x1da   : > { %5222 = vmatpush3.msra.mxu0 %v7673_v35  ;;  %5285 = vmatprep.subr.mxu1 %v7648_v25 }
 0x1db   : > { %5141 = vmatprep.mubr.f32.mxu0 %v6874_v29  ;;  %5203 = vmatprep.mubr.f32.mxu1 %v7675_v56  ;;  %v7685_v29 = vld [vmem:[#allocation47_spill] sm:$0xff] }
 0x1dc   : > { %5223 = vmatprep.subr.mxu0 %v7676_v58  ;;  %5286 = vmatpush3.msra.mxu1 %v7648_v25 }
 0x1dd   : > { %5224 = vmatpush3.msra.mxu0 %v7676_v58  ;;  %5287 = vmatprep.subr.mxu1 %v7650_v46 }
 0x1de   : > { %5225 = vmatprep.subr.mxu0 %v7677_v32  ;;  %5288 = vmatpush3.msra.mxu1 %v7650_v46 }
 0x1df   : > { %5142 = vmatmul.mubr.f32.gmra.mxu0 %v6881_v24  ;;  %5204 = vmatmul.mubr.f32.gmra.mxu1 %v7678_v59  ;;  %v7686_v24 = vld [vmem:[#allocation49_spill] sm:$0xff] }
 0x1e0   : > { %5226 = vmatpush3.msra.mxu0 %v7677_v32  ;;  %5289 = vmatprep.subr.mxu1 %v7652_v27 }
 0x1e1   : > { %5144 = vmatprep.mubr.f32.mxu0 %v6894_v37  ;;  %5206 = vmatprep.mubr.f32.mxu1 %v7679_v50 }
 0x1e2   : > { %5227 = vmatprep.subr.mxu0 %v7680_v2  ;;  %5290 = vmatpush3.msra.mxu1 %v7652_v27 }
 0x1e3   : > { %5228 = vmatpush3.msra.mxu0 %v7680_v2  ;;  %5291 = vmatprep.subr.mxu1 %v7654_v45 }
 0x1e4   : > { %5229 = vmatprep.subr.mxu0 %v7681_v0  ;;  %5292 = vmatpush3.msra.mxu1 %v7654_v45 }
 0x1e5   : > { %5145 = vmatmul.mubr.f32.gmra.mxu0 %v6900_v52  ;;  %5207 = vmatmul.mubr.f32.gmra.mxu1 %v2945_v15 }
 0x1e6   : > { %5230 = vmatpush3.msra.mxu0 %v7681_v0  ;;  %5293 = vmatprep.subr.mxu1 %v7656_v43 }
 0x1e7   : > { %5147 = vmatprep.mubr.f32.mxu0 %v6910_v20  ;;  %5231 = vmatprep.subr.mxu0 %v7682_v22 }
 0x1e8   : > { %5294 = vmatpush3.msra.mxu1 %v7656_v43  ;;  %5297 = vmatprep.mubr.f32.mxu1 %v6686_v61 }
 0x1e9   : > { %5232 = vmatpush3.msra.mxu0 %v7682_v22  ;;  %5295 = vmatprep.subr.mxu1 %v7658_v10 }
 0x1ea   : > { %5233 = vmatprep.subr.mxu0 %v7683_v23  ;;  %5296 = vmatpush3.msra.mxu1 %v7658_v10 }
 0x1eb   : > { %5148 = vmatmul.mubr.f32.gmra.mxu0 %v6927_v33  ;;  %5298 = vmatmul.mubr.f32.vlgmr.msra.gmra.mxu1 %v6680_v47 }
 0x1ec   : > { %5234 = vmatpush3.msra.mxu0 %v7683_v23  ;;  %5150 = vmatprep.mubr.f32.mxu0 %v6934_v16 }
 0x1ed   : > { %5235 = vmatprep.subr.mxu0 %v7684_v38  ;;  %5300 = vmatprep.mubr.f32.mxu1 %v6711_v12 }
 0x1ee   : > { %5236 = vmatpush3.msra.mxu0 %v7684_v38 }
 0x1ef   : > { %5237 = vmatprep.subr.mxu0 %v7685_v29  ;;  %5151 = vmatmul.mubr.f32.gmra.mxu0 %v6951_v49 }
 0x1f0   : > { %5238 = vmatpush3.msra.mxu0 %v7685_v29  ;;  %5301 = vmatmul.mubr.f32.gmra.mxu1 %v6715_v51 }
 0x1f1   : > { %5239 = vmatprep.subr.mxu0 %v7686_v24  ;;  %5241 = vmatprep.mubr.f32.mxu0 %v6686_v61 }
 0x1f2   : > { %5303 = vmatprep.mubr.f32.mxu1 %v6732_v3  ;;  %5240 = vmatpush3.msra.mxu0 %v7686_v24 }
 0x1f3   : > { %5242 = vmatmul.mubr.f32.vlgmr.msra.gmra.mxu0 %v6680_v47 }
 0x1f4   : > { %5304 = vmatmul.mubr.f32.gmra.mxu1 %v6747_v31  ;;  %5244 = vmatprep.mubr.f32.mxu0 %v6711_v12 }
 0x1f5   : > { %5306 = vmatprep.mubr.f32.mxu1 %v6757_v4 }
 0x1f7   : > { %5245 = vmatmul.mubr.f32.gmra.mxu0 %v6715_v51 }
 0x1f8   : > { %5307 = vmatmul.mubr.f32.gmra.mxu1 %v6793_v6  ;;  %5247 = vmatprep.mubr.f32.mxu0 %v6732_v3 }
 0x1f9   : > { %5309 = vmatprep.mubr.f32.mxu1 %v6817_v18 }
 0x1fb   : > { %5248 = vmatmul.mubr.f32.gmra.mxu0 %v6747_v31 }
 0x1fc   : > { %5310 = vmatmul.mubr.f32.gmra.mxu1 %v6829_v14  ;;  %5250 = vmatprep.mubr.f32.mxu0 %v6757_v4 }
 0x1fd   : > { %5312 = vmatprep.mubr.f32.mxu1 %v6842_v30 }
 0x1ff   : > { %5251 = vmatmul.mubr.f32.gmra.mxu0 %v6793_v6 }
 0x200   : > { %5313 = vmatmul.mubr.f32.gmra.mxu1 %v6864_v42  ;;  %5253 = vmatprep.mubr.f32.mxu0 %v6817_v18 }
 0x201   : > { %5315 = vmatprep.mubr.f32.mxu1 %v6877_v39 }
 0x203   : > { %5254 = vmatmul.mubr.f32.gmra.mxu0 %v6829_v14 }
 0x204   : > { %5316 = vmatmul.mubr.f32.gmra.mxu1 %v6884_v62  ;;  %5256 = vmatprep.mubr.f32.mxu0 %v6842_v30 }
 0x205   : > { %5318 = vmatprep.mubr.f32.mxu1 %v6907_v7 }
 0x207   : > { %5257 = vmatmul.mubr.f32.gmra.mxu0 %v6864_v42 }
 0x208   : > { %5319 = vmatmul.mubr.f32.gmra.mxu1 %v6931_v5  ;;  %5259 = vmatprep.mubr.f32.mxu0 %v6877_v39 }
 0x20b   : > { %5260 = vmatmul.mubr.f32.gmra.mxu0 %v6884_v62 }
 0x20c   : > { %5262 = vmatprep.mubr.f32.mxu0 %v6907_v7 }
 0x20f   : > { %5263 = vmatmul.mubr.f32.gmra.mxu0 %v6931_v5 }
 0x24e   : > { %v5075_v47 = vpop.f32.mrf.mxu1 }
 0x250   : > { %v7125_v61 = vpop.f32.mrf.mxu1 }
 0x254   : > { %v7127_v12 = vpop.f32.mrf.mxu1 }
 0x256   : > { %v7129_v51 = vpop.f32.mrf.mxu1 }
 0x258   : > { %v7131_v3 = vpop.f32.mrf.mxu1 }
 0x259   : > { %v5019_v31 = vpop.f32.mrf.mxu0 }
 0x25a   : > { %v7133_v4 = vpop.f32.mrf.mxu1  ;;  %v3107_v29 = vadd.f32 %v5075_v47, %v5019_v31 }
 0x25b   : > { %v2799_v6 = vpop.f32.mrf.mxu0 }
 0x25f   : > { %v7135_v18 = vpop.f32.mrf.mxu1 }
 0x261   : > { %v7137_v14 = vpop.f32.mrf.mxu1 }
 0x263   : > { %v5022_v30 = vpop.f32.mrf.mxu0 }
 0x264   : > { %v7139_v42 = vpop.f32.mrf.mxu1 }
 0x265   : > { %v2819_v39 = vpop.f32.mrf.mxu0 }
 0x266   : > { %v7141_v62 = vpop.f32.mrf.mxu1 }
 0x268   : > { %v7143_v25 = vpop.f32.mrf.mxu1 }
 0x26a   : > { %v7145_v37 = vpop.f32.mrf.mxu0  ;;  %v7147_v16 = vpop.f32.mrf.mxu1 }
 0x26c   : > { %v7149_v52 = vpop.f32.mrf.mxu0 }
 0x26e   : > { %v7151_v27 = vpop.f32.mrf.mxu0  ;;  %v7153_v7 = vpop.f32.mrf.mxu1 }
 0x26f   : > { %7687 = vst [vmem:[#allocation52_spill] sm:$0xff] %v7153_v7 }
 0x270   : > { %v7155_v20 = vpop.f32.mrf.mxu0  ;;  %v7157_v46 = vpop.f32.mrf.mxu1 }
 0x271   : > { %7688 = vst [vmem:[#allocation53_spill] sm:$0xff] %v7157_v46 }
 0x272   : > { %v7159_v43 = vpop.f32.mrf.mxu0 }
 0x274   : > { %v7161_v33 = vpop.f32.mrf.mxu0 }
 0x275   : > { %v7163_v5 = vpop.f32.mrf.mxu1 }
 0x276   : > { %7689 = vst [vmem:[#allocation54_spill] sm:$0xff] %v7163_v5  ;;  %v7165_v41 = vpop.f32.mrf.mxu0 }
 0x277   : > { %v7167_v45 = vpop.f32.mrf.mxu1 }
 0x278   : > { %7690 = vst [vmem:[#allocation50_spill] sm:$0xff] %v7167_v45  ;;  %v7169_v55 = vpop.f32.mrf.mxu0 }
 0x27b   : > { %v7171_v49 = vpop.f32.mrf.mxu0  ;;  %v5187_v21 = vpop.f32.mrf.mxu1 }
 0x27d   : > { %v7173_v63 = vpop.f32.mrf.mxu0  ;;  %v3488_v44 = vpop.f32.mrf.mxu1 }
 0x27e   : > { %7691 = vst [vmem:[#allocation51_spill] sm:$0xff] %v7173_v63 }
 0x281   : > { %v7175_v15 = vpop.f32.mrf.mxu0  ;;  %v5190_v10 = vpop.f32.mrf.mxu1 }
 0x282   : > { %7692 = vst [vmem:[#allocation55_spill] sm:$0xff] %v7175_v15 }
 0x283   : > { %v7177_v11 = vpop.f32.mrf.mxu0  ;;  %v3504_v60 = vpop.f32.mrf.mxu1 }
 0x284   : > { %7693 = vst [vmem:[#allocation56_spill] sm:$0xff] %v7177_v11 }
 0x287   : > { %v5131_v54 = vpop.f32.mrf.mxu0  ;;  %v7179_v28 = vpop.f32.mrf.mxu1 }
 0x288   : > { %v3302_v11 = vadd.f32 %v5131_v54, %v3107_v29 }
 0x289   : > { %v3294_v48 = vpop.f32.mrf.mxu0  ;;  %v7181_v17 = vpop.f32.mrf.mxu1 }
 0x28a   : > { %v3497_v46 = vadd.f32 %v5187_v21, %v3302_v11 }
 0x28d   : > { %v5134_v34 = vpop.f32.mrf.mxu0  ;;  %v7183_v9 = vpop.f32.mrf.mxu1 }
 0x28f   : > { %v3308_v36 = vpop.f32.mrf.mxu0  ;;  %v7185_v1 = vpop.f32.mrf.mxu1 }
 0x293   : > { %v5137_v8 = vpop.f32.mrf.mxu0  ;;  %v7187_v19 = vpop.f32.mrf.mxu1 }
 0x295   : > { %v3322_v53 = vpop.f32.mrf.mxu0  ;;  %v7189_v40 = vpop.f32.mrf.mxu1 }
 0x299   : > { %v5140_v13 = vpop.f32.mrf.mxu0  ;;  %v7191_v57 = vpop.f32.mrf.mxu1 }
 0x29a   : > { %7694 = vst [vmem:[#allocation2_spill] sm:$0xff] %v7191_v57 }
 0x29b   : > { %v3336_v35 = vpop.f32.mrf.mxu0  ;;  %v7193_v26 = vpop.f32.mrf.mxu1 }
 0x29c   : > { %7695 = vst [vmem:[#allocation4_spill] sm:$0xff] %v7193_v26 }
 0x29f   : > { %v7195_v56 = vpop.f32.mrf.mxu0  ;;  %v7197_v58 = vpop.f32.mrf.mxu1 }
 0x2a0   : > { %7696 = vst [vmem:[#allocation7_spill] sm:$0xff] %v7197_v58  ;;  %v3101_v58 = vadd.f32 %v7125_v61, %v2799_v6  ;;  %v3131_v61 = vadd.f32 %v7131_v3, %v7145_v37  ;;  %v3143_v3 = vadd.f32 %v7135_v18, %v7151_v27 }
 0x2a1   : > { %v7199_v32 = vpop.f32.mrf.mxu0  ;;  %v7201_v59 = vpop.f32.mrf.mxu1 }
 0x2a2   : > { %7697 = vst [vmem:[#allocation10_spill] sm:$0xff] %v7201_v59  ;;  %v3119_v59 = vadd.f32 %v7127_v12, %v5022_v30  ;;  %v3295_v15 = vadd.f32 %v3294_v48, %v3101_v58  ;;  %v3125_v12 = vadd.f32 %v7133_v4, %v7149_v52  ;;  %v3137_v4 = vadd.f32 %v7137_v14, %v7155_v20 }
 0x2a3   : > { %v3155_v14 = vadd.f32 %v7139_v42, %v7159_v43  ;;  %v3149_v20 = vadd.f32 %v7141_v62, %v7161_v33  ;;  %v3167_v62 = vadd.f32 %v7143_v25, %v7165_v41 }
 0x2a4   : > { %v3316_v57 = vadd.f32 %v5134_v34, %v3119_v59  ;;  %v3489_v7 = vadd.f32 %v3488_v44, %v3295_v15  ;;  %v3323_v21 = vadd.f32 %v3322_v53, %v3125_v12  ;;  %v3337_v53 = vadd.f32 %v3336_v35, %v3137_v4 }
 0x2a5   : > { %v7203_v50 = vpop.f32.mrf.mxu0  ;;  %v7205_v2 = vpop.f32.mrf.mxu1 }
 0x2a6   : > { %7698 = vst [vmem:[#allocation13_spill] sm:$0xff] %v7205_v2  ;;  %v3513_v48 = vadd.f32 %v5190_v10, %v3316_v57  ;;  %v3521_v18 = vadd.f32 %v7181_v17, %v3323_v21  ;;  %v3537_v42 = vadd.f32 %v7185_v1, %v3337_v53  ;;  %v3372_v1 = vadd.f32 %v7203_v50, %v3167_v62 }
 0x2a7   : > { %v7207_v0 = vpop.f32.mrf.mxu0  ;;  %v7209_v22 = vpop.f32.mrf.mxu1 }
 0x2a8   : > { %7699 = vst [vmem:[#allocation14_spill] sm:$0xff] %v7209_v22  ;;  %v3113_v22 = vadd.f32 %v7129_v51, %v2819_v39  ;;  %v3330_v51 = vadd.f32 %v5137_v8, %v3131_v61  ;;  %v3344_v8 = vadd.f32 %v5140_v13, %v3143_v3  ;;  %v3358_v13 = vadd.f32 %v7195_v56, %v3155_v14  ;;  %v7704_v61 = vld [vmem:[#allocation53_spill] sm:$0xff]  ;;  %v7709_v3 = vld [vmem:[#allocation55_spill] sm:$0xff] }
 0x2a9   : > { %v7713_v14 = vld [vmem:[#allocation7_spill] sm:$0xff] }
 0x2aa   : > { %v3309_v31 = vadd.f32 %v3308_v36, %v3113_v22  ;;  %v3529_v10 = vadd.f32 %v7179_v28, %v3330_v51  ;;  %v3545_v22 = vadd.f32 %v7183_v9, %v3344_v8  ;;  %v3561_v29 = vadd.f32 %v7187_v19, %v3358_v13 }
 0x2ab   : > { %v7211_v23 = vpop.f32.mrf.mxu0  ;;  %v5299_v38 = vpop.f32.mrf.mxu1 }
 0x2ac   : > { %7700 = vst [vmem:[#allocation3_spill] sm:$0xff] %v7211_v23 }
 0x2ad   : > { %v7213_v24 = vpop.f32.mrf.mxu0  ;;  %v3904_v45 = vpop.f32.mrf.mxu1 }
 0x2ae   : > { %7701 = vst [vmem:[#allocation6_spill] sm:$0xff] %v7213_v24 }
 0x2af   : > { %v7216_v5 = vpop.f32.mrf.mxu0 }
 0x2b0   : > { %v5302_v2 = vpop.f32.mrf.mxu1 }
 0x2b1   : > { %v7219_v26 = vpop.f32.mrf.mxu0 }
 0x2b2   : > { %v3916_v23 = vpop.f32.mrf.mxu1 }
 0x2b3   : > { %v5243_v47 = vpop.f32.mrf.mxu0 }
 0x2b4   : > { %v3734_v24 = vadd.f32 %v5243_v47, %v3497_v46  ;;  %v5305_v63 = vpop.f32.mrf.mxu1  ;;  %v3505_v46 = vadd.f32 %v3504_v60, %v3309_v31 }
 0x2b5   : > { %v3727_v6 = vpop.f32.mrf.mxu0 }
 0x2b6   : > { %v3728_v30 = vadd.f32 %v3727_v6, %v3489_v7  ;;  %v3928_v54 = vpop.f32.mrf.mxu1  ;;  %v7226_v58 = vadd.f32 %v5299_v38, %v3734_v24 }
 0x2b7   : > { %v5246_v39 = vpop.f32.mrf.mxu0 }
 0x2b8   : > { %v3746_v11 = vadd.f32 %v5246_v39, %v3513_v48  ;;  %v5308_v34 = vpop.f32.mrf.mxu1  ;;  %4000 = vmax.xlane.f32.xlu0 %v7226_v58  ;;  %v7235_v15 = vadd.f32 %v3904_v45, %v3728_v30  ;;  %v7707_v39 = vld [vmem:[#allocation2_spill] sm:$0xff] }
 0x2b9   : > { %v3739_v37 = vpop.f32.mrf.mxu0  ;;  %v3577_v21 = vadd.f32 %v7707_v39, %v3372_v1 }
 0x2ba   : > { %v3740_v52 = vadd.f32 %v3739_v37, %v3505_v46  ;;  %v3940_v7 = vpop.f32.mrf.mxu1  ;;  %v7233_v44 = vadd.f32 %v5302_v2, %v3746_v11  ;;  %v3351_v2 = vadd.f32 %v7199_v32, %v3149_v20  ;;  %v7710_v37 = vld [vmem:[#allocation54_spill] sm:$0xff] }
 0x2bb   : > { %v5249_v36 = vpop.f32.mrf.mxu0  ;;  %v3191_v4 = vadd.f32 %v7710_v37, %v7709_v3 }
 0x2bc   : > { %v5311_v57 = vpop.f32.mrf.mxu1  ;;  %4004 = vmax.xlane.f32.xlu1 %v7233_v44  ;;  %3998 = vmax.xlane.f32.xlu0 %v7235_v15  ;;  %v3758_v45 = vadd.f32 %v5249_v36, %v3529_v10  ;;  %v7245_v59 = vadd.f32 %v3916_v23, %v3740_v52  ;;  %v3161_v23 = vadd.f32 %v7147_v16, %v7169_v55  ;;  %v7702_v16 = vld [vmem:[#allocation52_spill] sm:$0xff] }
 0x2bd   : > { %v3751_v27 = vpop.f32.mrf.mxu0  ;;  %v3553_v25 = vadd.f32 %v7189_v40, %v3351_v2  ;;  %v3179_v55 = vadd.f32 %v7702_v16, %v7171_v49  ;;  %v7706_v40 = vld [vmem:[#allocation6_spill] sm:$0xff]  ;;  %v7708_v49 = vld [vmem:[#allocation4_spill] sm:$0xff] }
 0x2be   : > { %v3752_v60 = vadd.f32 %v3751_v27, %v3521_v18  ;;  %v3952_v28 = vpop.f32.mrf.mxu1  ;;  %v7259_v32 = vadd.f32 %v5305_v63, %v3758_v45  ;;  %v3365_v47 = vadd.f32 %v7207_v0, %v3161_v23  ;;  %v7703_v63 = vld [vmem:[#allocation51_spill] sm:$0xff]  ;;  %v3400_v45 = vadd.f32 %v7216_v5, %v3191_v4  ;;  %v7715_v23 = vld [vmem:[#allocation13_spill] sm:$0xff]  ;;  %v7716_v5 = vld [vmem:[#allocation14_spill] sm:$0xff] }
 0x2bf   : > { %v5252_v35 = vpop.f32.mrf.mxu0  ;;  %v3173_v6 = vadd.f32 %v7704_v61, %v7703_v63  ;;  %v7705_v0 = vld [vmem:[#allocation3_spill] sm:$0xff] }
 0x2c0   : > { %v5314_v17 = vpop.f32.mrf.mxu1  ;;  %4002 = vmax.xlane.f32.xlu1 %v7245_v59  ;;  %v7252_v43 = vadd.f32 %v3928_v54, %v3752_v60  ;;  %v3770_v56 = vadd.f32 %v5252_v35, %v3545_v22  ;;  %v3386_v30 = vadd.f32 %v7705_v0, %v3179_v55  ;;  %v3569_v11 = vadd.f32 %v7708_v49, %v3365_v47 }
 0x2c1   : > { %v3763_v33 = vpop.f32.mrf.mxu0  ;;  %v3379_v51 = vadd.f32 %v7706_v40, %v3173_v6 }
 0x2c2   : > { %v3764_v38 = vadd.f32 %v3763_v33, %v3537_v42  ;;  %4006 = vmax.xlane.f32.xlu0 %v7252_v43  ;;  %v3964_v9 = vpop.f32.mrf.mxu1  ;;  %v7273_v50 = vadd.f32 %v5308_v34, %v3770_v56  ;;  %v7711_v34 = vld [vmem:[#allocation56_spill] sm:$0xff]  ;;  %v3593_v27 = vadd.f32 %v7713_v14, %v3386_v30  ;;  %v3609_v56 = vadd.f32 %v7715_v23, %v3400_v45 }
 0x2c3   : > { %v5255_v24 = vpop.f32.mrf.mxu0 }
 0x2c4   : > { %4008 = vmax.xlane.f32.xlu1 %v7259_v32  ;;  %v7266_v41 = vadd.f32 %v3940_v7, %v3764_v38  ;;  %v3782_v12 = vadd.f32 %v5255_v24, %v3561_v29  ;;  %v5317_v54 = vpop.f32.mrf.mxu1  ;;  %v7712_v7 = vld [vmem:[#allocation50_spill] sm:$0xff] }
 0x2c5   : > { %v3775_v31 = vpop.f32.mrf.mxu0  ;;  %v3185_v10 = vadd.f32 %v7712_v7, %v7711_v34 }
 0x2c6   : > { %v3776_v19 = vadd.f32 %v3775_v31, %v3553_v25  ;;  %4010 = vmax.xlane.f32.xlu0 %v7266_v41  ;;  %v7287_v53 = vadd.f32 %v5311_v57, %v3782_v12  ;;  %v3976_v18 = vpop.f32.mrf.mxu1 }
 0x2c7   : > { %v5258_v48 = vpop.f32.mrf.mxu0  ;;  %v3393_v60 = vadd.f32 %v7219_v26, %v3185_v10 }
 0x2c8   : > { %4012 = vmax.xlane.f32.xlu1 %v7273_v50  ;;  %v7280_v46 = vadd.f32 %v3952_v28, %v3776_v19  ;;  %v3794_v36 = vadd.f32 %v5258_v48, %v3577_v21  ;;  %v7714_v28 = vld [vmem:[#allocation10_spill] sm:$0xff]  ;;  %v5320_v62 = vpop.f32.mrf.mxu1 }
 0x2c9   : > { %v3787_v52 = vpop.f32.mrf.mxu0  ;;  %v3585_v13 = vadd.f32 %v7714_v28, %v3379_v51  ;;  %v3601_v26 = vadd.f32 %v7716_v5, %v3393_v60 }
 0x2ca   : > { %v3788_v8 = vadd.f32 %v3787_v52, %v3569_v11  ;;  %4014 = vmax.xlane.f32.xlu0 %v7280_v46  ;;  %v7297_v57 = vadd.f32 %v5314_v17, %v3794_v36  ;;  %v3988_v47 = vpop.f32.mrf.mxu1 }
 0x2cb   : > { %v5261_v20 = vpop.f32.mrf.mxu0 }
 0x2cc   : > { %4016 = vmax.xlane.f32.xlu1 %v7287_v53  ;;  %v7294_v35 = vadd.f32 %v3964_v9, %v3788_v8  ;;  %v3806_v22 = vadd.f32 %v5261_v20, %v3593_v27 }
 0x2cd   : > { %v3799_v2 = vpop.f32.mrf.mxu0 }
 0x2ce   : > { %v3800_v42 = vadd.f32 %v3799_v2, %v3585_v13  ;;  %4018 = vmax.xlane.f32.xlu0 %v7294_v35  ;;  %v7305_v1 = vadd.f32 %v5317_v54, %v3806_v22 }
 0x2cf   : > { %v5264_v33 = vpop.f32.mrf.mxu0 }
 0x2d0   : > { %4020 = vmax.xlane.f32.xlu1 %v7297_v57  ;;  %v7302_v38 = vadd.f32 %v3976_v18, %v3800_v42  ;;  %v3818_v9 = vadd.f32 %v5264_v33, %v3609_v56 }
 0x2d1   : > { %v3811_v29 = vpop.f32.mrf.mxu0 }
 0x2d2   : > { %v3812_v24 = vadd.f32 %v3811_v29, %v3601_v26  ;;  %4022 = vmax.xlane.f32.xlu0 %v7302_v38  ;;  %v7311_v25 = vadd.f32 %v5320_v62, %v3818_v9 }
 0x2d4   : > { %4024 = vmax.xlane.f32.xlu1 %v7305_v1  ;;  %v7308_v17 = vadd.f32 %v3988_v47, %v3812_v24 }
 0x2d6   : > { %4026 = vmax.xlane.f32.xlu0 %v7308_v17 }
 0x2d8   : > { %4028 = vmax.xlane.f32.xlu1 %v7311_v25 }
 0x341   : > { %v4001_v16 = vpop.xlane.xlu0 %4000 }
 0x342   : > { %v4031_v55 = vsub.f32 %v7226_v58, %v4001_v16 }
 0x344   : > { %v4048_v31 = vmul.f32 1.442695, %v4031_v55 }
 0x345   : > { %v4005_v63 = vpop.xlane.xlu1 %4004  ;;  %v3999_v61 = vpop.xlane.xlu0 %3998 }
 0x346   : > { %5329 = vpow2.f32 %v4048_v31  ;;  %v4033_v6 = vsub.f32 %v7233_v44, %v4005_v63  ;;  %v4030_v12 = vsub.f32 %v7235_v15, %v3999_v61 }
 0x348   : > { %v4052_v19 = vmul.f32 1.442695, %v4033_v6  ;;  %v4046_v0 = vmul.f32 1.442695, %v4030_v12 }
 0x349   : > { %v4003_v30 = vpop.xlane.xlu1 %4002 }
 0x34a   : > { %5331 = vpow2.f32 %v4052_v19  ;;  %v4032_v54 = vsub.f32 %v7245_v59, %v4003_v30 }
 0x34b   : > { %5333 = vpow2.f32 %v4046_v0  ;;  %v4007_v48 = vpop.xlane.xlu0 %4006 }
 0x34c   : > { %v4050_v40 = vmul.f32 1.442695, %v4032_v54  ;;  %v4034_v51 = vsub.f32 %v7252_v43, %v4007_v48 }
 0x34d   : > { %v4009_v58 = vpop.xlane.xlu1 %4008 }
 0x34e   : > { %5335 = vpow2.f32 %v4050_v40  ;;  %v4035_v39 = vsub.f32 %v7259_v32, %v4009_v58  ;;  %v4054_v21 = vmul.f32 1.442695, %v4034_v51 }
 0x34f   : > { %v4011_v49 = vpop.xlane.xlu0 %4010 }
 0x350   : > { %v4056_v44 = vmul.f32 1.442695, %v4035_v39  ;;  %v4036_v15 = vsub.f32 %v7266_v41, %v4011_v49 }
 0x351   : > { %v4013_v11 = vpop.xlane.xlu1 %4012 }
 0x352   : > { %5337 = vpow2.f32 %v4056_v44  ;;  %v4037_v3 = vsub.f32 %v7273_v50, %v4013_v11  ;;  %v4058_v59 = vmul.f32 1.442695, %v4036_v15 }
 0x353   : > { %v7322_v37 = vpop.eup %5329  ;;  %5339 = vpow2.f32 %v4054_v21  ;;  %v4015_v4 = vpop.xlane.xlu0 %4014 }
 0x354   : > { %v4060_v52 = vmul.f32 1.442695, %v4037_v3  ;;  %v4038_v43 = vsub.f32 %v7280_v46, %v4015_v4  ;;  %4080 = vadd.xlane.f32.xlu1 %v7322_v37 }
 0x355   : > { %v4017_v32 = vpop.xlane.xlu1 %4016 }
 0x356   : > { %5341 = vpow2.f32 %v4060_v52  ;;  %v4039_v34 = vsub.f32 %v7287_v53, %v4017_v32  ;;  %v4062_v41 = vmul.f32 1.442695, %v4038_v43 }
 0x357   : > { %v7327_v7 = vpop.eup %5331  ;;  %5343 = vpow2.f32 %v4058_v59  ;;  %v4019_v10 = vpop.xlane.xlu0 %4018 }
 0x358   : > { %v7329_v50 = vpop.eup %5333  ;;  %v4064_v36 = vmul.f32 1.442695, %v4039_v34  ;;  %v4040_v8 = vsub.f32 %v7294_v35, %v4019_v10  ;;  %4084 = vadd.xlane.f32.xlu1 %v7327_v7 }
 0x359   : > { %4078 = vadd.xlane.f32.xlu0 %v7329_v50  ;;  %v4021_v46 = vpop.xlane.xlu1 %4020 }
 0x35a   : > { %5345 = vpow2.f32 %v4064_v36  ;;  %v4041_v18 = vsub.f32 %v7297_v57, %v4021_v46  ;;  %v4066_v53 = vmul.f32 1.442695, %v4040_v8 }
 0x35b   : > { %v7335_v14 = vpop.eup %5335  ;;  %5347 = vpow2.f32 %v4062_v41  ;;  %v4023_v27 = vpop.xlane.xlu0 %4022 }
 0x35c   : > { %v4068_v20 = vmul.f32 1.442695, %v4041_v18  ;;  %v4042_v45 = vsub.f32 %v7302_v38, %v4023_v27 }
 0x35d   : > { %4082 = vadd.xlane.f32.xlu0 %v7335_v14  ;;  %v4025_v60 = vpop.xlane.xlu1 %4024 }
 0x35e   : > { %5349 = vpow2.f32 %v4068_v20  ;;  %v4043_v28 = vsub.f32 %v7305_v1, %v4025_v60  ;;  %v4070_v35 = vmul.f32 1.442695, %v4042_v45 }
 0x35f   : > { %v7340_v13 = vpop.eup %5337  ;;  %5351 = vpow2.f32 %v4066_v53  ;;  %v4027_v2 = vpop.xlane.xlu0 %4026 }
 0x360   : > { %v7342_v22 = vpop.eup %5339  ;;  %v4072_v42 = vmul.f32 1.442695, %v4043_v28  ;;  %v4044_v57 = vsub.f32 %v7308_v17, %v4027_v2  ;;  %4088 = vadd.xlane.f32.xlu1 %v7340_v13 }
 0x361   : > { %4086 = vadd.xlane.f32.xlu0 %v7342_v22  ;;  %v4029_v62 = vpop.xlane.xlu1 %4028 }
 0x362   : > { %5353 = vpow2.f32 %v4072_v42  ;;  %v4045_v33 = vsub.f32 %v7311_v25, %v4029_v62  ;;  %v4074_v56 = vmul.f32 1.442695, %v4044_v57 }
 0x363   : > { %v7348_v23 = vpop.eup %5341  ;;  %5355 = vpow2.f32 %v4070_v35 }
 0x364   : > { %v7350_v5 = vpop.eup %5343  ;;  %v4076_v26 = vmul.f32 1.442695, %v4045_v33  ;;  %4092 = vadd.xlane.f32.xlu1 %v7348_v23 }
 0x365   : > { %4090 = vadd.xlane.f32.xlu0 %v7350_v5 }
 0x366   : > { %5357 = vpow2.f32 %v4076_v26 }
 0x367   : > { %v7354_v38 = vpop.eup %5345  ;;  %5359 = vpow2.f32 %v4074_v56 }
 0x368   : > { %v7356_v29 = vpop.eup %5347  ;;  %4096 = vadd.xlane.f32.xlu1 %v7354_v38 }
 0x369   : > { %4094 = vadd.xlane.f32.xlu0 %v7356_v29 }
 0x36b   : > { %v7360_v9 = vpop.eup %5349 }
 0x36c   : > { %v7362_v24 = vpop.eup %5351  ;;  %4100 = vadd.xlane.f32.xlu1 %v7360_v9 }
 0x36d   : > { %4098 = vadd.xlane.f32.xlu0 %v7362_v24 }
 0x36f   : > { %v7366_v1 = vpop.eup %5353 }
 0x370   : > { %v7368_v47 = vpop.eup %5355  ;;  %4104 = vadd.xlane.f32.xlu1 %v7366_v1 }
 0x371   : > { %4102 = vadd.xlane.f32.xlu0 %v7368_v47 }
 0x373   : > { %v7372_v17 = vpop.eup %5357 }
 0x374   : > { %v7374_v25 = vpop.eup %5359  ;;  %4108 = vadd.xlane.f32.xlu1 %v7372_v17 }
 0x375   : > { %4106 = vadd.xlane.f32.xlu0 %v7374_v25 }
 0x3dd   : > { %v4081_v16 = vpop.xlane.xlu1 %4080 }
 0x3de   : > { %5361 = vrcp.f32 %v4081_v16 }
 0x3e1   : > { %v4085_v55 = vpop.xlane.xlu1 %4084 }
 0x3e2   : > { %5363 = vrcp.f32 %v4085_v55  ;;  %v4079_v31 = vpop.xlane.xlu0 %4078 }
 0x3e3   : > { %5365 = vrcp.f32 %v4079_v31 }
 0x3e6   : > { %v4083_v63 = vpop.xlane.xlu0 %4082 }
 0x3e7   : > { %5367 = vrcp.f32 %v4083_v63 }
 0x3e9   : > { %v4089_v61 = vpop.xlane.xlu1 %4088 }
 0x3ea   : > { %5369 = vrcp.f32 %v4089_v61  ;;  %v4087_v6 = vpop.xlane.xlu0 %4086 }
 0x3eb   : > { %v5362_v12 = vpop.eup %5361  ;;  %5371 = vrcp.f32 %v4087_v6 }
 0x3ec   : > { %v4113_v19 = vmul.f32 %v5362_v12, %v7322_v37 }
 0x3ed   : > { %v4093_v0 = vpop.xlane.xlu1 %4092 }
 0x3ee   : > { %4144 = vst.msk [vmem:[%s7382_s7 + $0x8] sm:$0xff] %vm4142_vm2, %v4113_v19  ;;  %5373 = vrcp.f32 %v4093_v0  ;;  %v4091_v30 = vpop.xlane.xlu0 %4090 }
 0x3ef   : > { %v5364_v54 = vpop.eup %5363  ;;  %5375 = vrcp.f32 %v4091_v30 }
 0x3f0   : > { %v5366_v48 = vpop.eup %5365  ;;  %v4117_v40 = vmul.f32 %v5364_v54, %v7327_v7 }
 0x3f1   : > { %v4111_v51 = vmul.f32 %v5366_v48, %v7329_v50  ;;  %v4097_v58 = vpop.xlane.xlu1 %4096 }
 0x3f2   : > { %4146 = vst.msk [vmem:[%s7382_s7 + $0x18] sm:$0xff] %vm4142_vm2, %v4117_v40  ;;  %5377 = vrcp.f32 %v4097_v58  ;;  %v4095_v39 = vpop.xlane.xlu0 %4094 }
 0x3f3   : > { %4143 = vst.msk [vmem:[%s7382_s7] sm:$0xff] %vm4142_vm2, %v4111_v51  ;;  %5379 = vrcp.f32 %v4095_v39 }
 0x3f4   : > { %v5368_v21 = vpop.eup %5367 }
 0x3f5   : > { %v4115_v49 = vmul.f32 %v5368_v21, %v7335_v14  ;;  %v4101_v44 = vpop.xlane.xlu1 %4100 }
 0x3f6   : > { %5381 = vrcp.f32 %v4101_v44  ;;  %v4099_v15 = vpop.xlane.xlu0 %4098 }
 0x3f7   : > { %v5370_v11 = vpop.eup %5369  ;;  %4145 = vst.msk [vmem:[%s7382_s7 + $0x10] sm:$0xff] %vm4142_vm2, %v4115_v49  ;;  %5383 = vrcp.f32 %v4099_v15 }
 0x3f8   : > { %v5372_v3 = vpop.eup %5371  ;;  %v4121_v37 = vmul.f32 %v5370_v11, %v7340_v13 }
 0x3f9   : > { %v4119_v59 = vmul.f32 %v5372_v3, %v7342_v22  ;;  %v4105_v4 = vpop.xlane.xlu1 %4104 }
 0x3fa   : > { %4148 = vst.msk [vmem:[%s7382_s7 + $0x28] sm:$0xff] %vm4142_vm2, %v4121_v37  ;;  %5385 = vrcp.f32 %v4105_v4  ;;  %v4103_v52 = vpop.xlane.xlu0 %4102 }
 0x3fb   : > { %v5374_v43 = vpop.eup %5373  ;;  %4147 = vst.msk [vmem:[%s7382_s7 + $0x20] sm:$0xff] %vm4142_vm2, %v4119_v59  ;;  %5387 = vrcp.f32 %v4103_v52 }
 0x3fc   : > { %v5376_v32 = vpop.eup %5375  ;;  %v4125_v34 = vmul.f32 %v5374_v43, %v7348_v23 }
 0x3fd   : > { %v4123_v7 = vmul.f32 %v5376_v32, %v7350_v5  ;;  %v4109_v41 = vpop.xlane.xlu1 %4108 }
 0x3fe   : > { %4150 = vst.msk [vmem:[%s7382_s7 + $0x38] sm:$0xff] %vm4142_vm2, %v4125_v34  ;;  %5389 = vrcp.f32 %v4109_v41  ;;  %v4107_v10 = vpop.xlane.xlu0 %4106 }
 0x3ff   : > { %v5378_v50 = vpop.eup %5377  ;;  %4149 = vst.msk [vmem:[%s7382_s7 + $0x30] sm:$0xff] %vm4142_vm2, %v4123_v7  ;;  %5391 = vrcp.f32 %v4107_v10 }
 0x400   : > { %v5380_v36 = vpop.eup %5379  ;;  %v4129_v8 = vmul.f32 %v5378_v50, %v7354_v38 }
 0x401   : > { %v4127_v46 = vmul.f32 %v5380_v36, %v7356_v29 }
 0x402   : > { %4152 = vst.msk [vmem:[%s7382_s7 + $0x48] sm:$0xff] %vm4142_vm2, %v4129_v8 }
 0x403   : > { %v5382_v18 = vpop.eup %5381  ;;  %4151 = vst.msk [vmem:[%s7382_s7 + $0x40] sm:$0xff] %vm4142_vm2, %v4127_v46 }
 0x404   : > { %v5384_v14 = vpop.eup %5383  ;;  %v4133_v53 = vmul.f32 %v5382_v18, %v7360_v9 }
 0x405   : > { %v4131_v27 = vmul.f32 %v5384_v14, %v7362_v24 }
 0x406   : > { %4154 = vst.msk [vmem:[%s7382_s7 + $0x58] sm:$0xff] %vm4142_vm2, %v4133_v53 }
 0x407   : > { %v5386_v20 = vpop.eup %5385  ;;  %4153 = vst.msk [vmem:[%s7382_s7 + $0x50] sm:$0xff] %vm4142_vm2, %v4131_v27 }
 0x408   : > { %v5388_v45 = vpop.eup %5387  ;;  %v4137_v60 = vmul.f32 %v5386_v20, %v7366_v1 }
 0x409   : > { %v4135_v28 = vmul.f32 %v5388_v45, %v7368_v47 }
 0x40a   : > { %4156 = vst.msk [vmem:[%s7382_s7 + $0x68] sm:$0xff] %vm4142_vm2, %v4137_v60 }
 0x40b   : > { %v5390_v13 = vpop.eup %5389  ;;  %4155 = vst.msk [vmem:[%s7382_s7 + $0x60] sm:$0xff] %vm4142_vm2, %v4135_v28 }
 0x40c   : > { %v5392_v35 = vpop.eup %5391  ;;  %v4141_v2 = vmul.f32 %v5390_v13, %v7372_v17 }
 0x40d   : > { %v4139_v22 = vmul.f32 %v5392_v35, %v7374_v25 }
 0x40e   : > { %4158 = vst.msk [vmem:[%s7382_s7 + $0x78] sm:$0xff] %vm4142_vm2, %v4141_v2 }
 0x40f   : > { %4157 = vst.msk [vmem:[%s7382_s7 + $0x70] sm:$0xff] %vm4142_vm2, %v4139_v22 }
 0x410 PF: > { %s16_s21 = sadd.s32 1, %s5399_s21  }
 0x411   : > { %p13_p4 = scmp.ge.s32.totalorder %s16_s21, 4  }
 0x413   :  { %15 = sbr.rel (!%p13_p4) target bundleno = 1 (0x1), region = 77 }

</bundles_post_ra>
